<compile_context>
chip_gen: v5e
topology: v5e:2x2
jax: 0.10.0
libtpu: 0.0.40
codegen_flags: <defaults>
</compile_context>

<pallas_src>
import math
import functools

import jax
import jax.numpy as jnp
from jax.experimental import pallas as pl
from jax.experimental.pallas import tpu as pltpu


# ----------------------------- glue helpers ---------------------------------

def get_pos_enc(seq_len, num_channels):
    """Sinusoidal positional encoding, identical to GatedAttn.get_pos_enc."""
    position = jnp.arange(seq_len, dtype=jnp.float32)
    num_timescales = num_channels // 2
    log_timescale_increment = math.log(10000.0) / (num_timescales - 1)
    inv_timescales = jnp.exp(
        jnp.arange(num_timescales, dtype=jnp.float32) * (-log_timescale_increment)
    )
    scaled_time = position[:, None] * inv_timescales[None, :]
    encoding = jnp.concatenate([jnp.sin(scaled_time), jnp.cos(scaled_time)], axis=1)
    pad = num_channels % 2
    if pad:
        encoding = jnp.pad(encoding, ((0, 0), (0, pad)))
    return encoding  # (seq_len, num_channels)


def weight_norm_effective(v, g):
    """PyTorch weight_norm (dim=0) effective weight for an nn.Linear weight.

    v: (out_features, in_features), g: (out_features,)
    """
    norm = jnp.sqrt(jnp.sum(v * v, axis=1, keepdims=True))
    return g[:, None] * v / norm


# ------------------------------ Pallas kernel --------------------------------

def gated_attn_kernel(x_ref, posT_ref, w_in_ref, w_gate_ref, bgT_ref, oT_ref, *,
                      num_heads, seq):
    BS, C = x_ref.shape            # BS = batch * seq, C = d_model
    dh = C // num_heads

    # Transposed activations: channels on sublanes, positions on lanes.
    hT = x_ref[...].T + posT_ref[...]                        # (C, BS)

    # in_proj (weight-normed, q-scale folded, no bias): (3C, C) @ (C, BS).
    projT = jnp.dot(w_in_ref[...], hT,
                    preferred_element_type=jnp.float32)      # (3C, BS)
    # torch.split(proj, (2C, C)) then split(memory, C):  k | v | q row blocks.
    kT = projT[:C]                                           # (C, BS)
    vT = projT[C:2 * C]                                      # (C, BS)
    qT = projT[2 * C:]                                       # (C, BS), pre-scaled

    # Head split is a free sublane regrouping: (C, BS) -> (H, dh, BS).
    qTh = qT.reshape(num_heads, dh, BS)
    kTh = kT.reshape(num_heads, dh, BS)
    vTh = vT.reshape(num_heads, dh, BS)

    # scores[h, i, j] = sum_d q[h, d, i] * k[h, d, j]
    # (single-vreg per-head transpose of q, then a standard batched matmul;
    #  equivalent to einsum 'hid,hdj->hij')
    qh = jnp.transpose(qTh, (0, 2, 1))                       # (H, BS, dh)
    s = jax.lax.dot_general(
        qh, kTh, (((2,), (1,)), ((0,), (0,))),
        preferred_element_type=jnp.float32)                  # (H, BS, BS)

    # Block-diagonal mask: batch b only attends within its own S positions of
    # the fused (B*S, B*S) score matrix.
    ri = jax.lax.broadcasted_iota(jnp.int32, (BS, 1), 0).astype(jnp.float32)
    ci = jax.lax.broadcasted_iota(jnp.int32, (1, BS), 1).astype(jnp.float32)
    inv_s = 1.0 / seq
    same_batch = (jnp.floor((ri + 0.5) * inv_s) ==
                  jnp.floor((ci + 0.5) * inv_s))             # (BS, BS)
    s = jnp.where(same_batch[None], s, -1e30)

    # Softmax over keys (lane axis); masked entries exp to exactly 0.
    m = jnp.max(s, axis=-1, keepdims=True)                   # (H, BS, 1)
    p = jnp.exp(s - m)
    l = jnp.sum(p, axis=-1, keepdims=True)                   # (H, BS, 1)
    r = pl.reciprocal(l, approx=True)                        # EUP
    r = r * (2.0 - l * r)                                    # Newton -> ~f32 exact
    p = p * r
    # TODO(synk): attention-weight dropout skipped (drop_prob = 0.0 here).

    # attnT[h, d, i] = sum_j v[h, d, j] * p[h, i, j]   (einsum 'hdj,hij->hdi')
    attnT = jax.lax.dot_general(
        vTh, p, (((2,), (2,)), ((0,), (0,))),
        preferred_element_type=jnp.float32)                  # (H, dh, BS)
    attnT = attnT.reshape(C, BS)                             # free merge, head-major

    # gate (weight-normed, with bias): (2C, C) @ (C, BS) + (2C, 1).
    gT = jnp.dot(w_gate_ref[...], attnT,
                 preferred_element_type=jnp.float32) + bgT_ref[...]   # (2C, BS)
    aT = gT[:C]
    bT = gT[C:]

    # Lane-dense output store: last dim of the output slab is BS = 128, so the
    # store is an unmasked `vst` (vs. masked partial stores for a C=32 minor
    # dim).  The wrapper transposes back to row-major outside the kernel.
    oT_ref[...] = aT * jax.nn.sigmoid(bT)                    # (C, BS)


# ------------------------------ wrapper --------------------------------------

def gated_attn(x_bhwc, w_in, w_gate, b_gate, *, num_heads):
    """x_bhwc: (B,H,W,C); w_in: (3C,C); w_gate: (2C,C); b_gate: (2C,)."""
    b, h, w, c = x_bhwc.shape
    S = h * w
    BS = b * S
    dh = c // num_heads

    x2 = x_bhwc.reshape(BS, c)                     # pure reshape (matches .view)

    # Positional encoding, generated already transposed and tiled over batch so
    # the kernel's lane axis (index = b*S + s) lines up: (C, B*S).
    posT = jnp.tile(get_pos_enc(S, c).T, (1, b))

    # Parameter preprocessing (done once): fold the per-head 1/sqrt(dh)
    # attention scale into the query rows of the in_proj weight.
    w_in_s = jnp.concatenate([w_in[:2 * c], w_in[2 * c:] * dh ** (-0.5)], axis=0)

    kernel = functools.partial(gated_attn_kernel, num_heads=num_heads, seq=S)
    outT = pl.pallas_call(
        kernel,
        # Kernel emits the transposed (C, B*S) slab: lane-dense stores.
        out_shape=jax.ShapeDtypeStruct((c, BS), jnp.float32),
        # Single invocation, whole arrays resident in VMEM (no grid, no
        # per-step DMAs / double-buffering of the replicated weights).
        in_specs=[pl.BlockSpec(memory_space=pltpu.MemorySpace.VMEM)] * 5,
        out_specs=pl.BlockSpec(memory_space=pltpu.MemorySpace.VMEM),
    )(x2, posT, w_in_s, w_gate, b_gate.reshape(2 * c, 1))

    # Wrapper-side layout plumbing back to (B, H, W, C).
    return outT.T.reshape(b, h, w, c)


# ------------------------- pure-JAX reference --------------------------------

def gated_attn_ref(x_bhwc, w_in, w_gate, b_gate, *, num_heads):
    b, h, w, c = x_bhwc.shape
    S = h * w
    dh = c // num_heads
    x = x_bhwc.reshape(b, S, c) + get_pos_enc(S, c)[None]
    proj = x @ w_in.T
    k, v, q = proj[..., :c], proj[..., c:2 * c], proj[..., 2 * c:]

    def split(t):
        return jnp.transpose(t.reshape(b, S, num_heads, dh), (0, 2, 1, 3))

    qh = split(q) * dh ** (-0.5)
    kh, vh = split(k), split(v)
    s = jnp.einsum("bhqd,bhkd->bhqk", qh, kh)
    p = jax.nn.softmax(s, axis=-1)
    attn = jnp.einsum("bhqk,bhkd->bhqd", p, vh)
    attn = jnp.transpose(attn, (0, 2, 1, 3)).reshape(b, S, c)
    g = attn @ w_gate.T + b_gate[None, None, :]
    a, bb = g[..., :c], g[..., c:]
    return (a * jax.nn.sigmoid(bb)).reshape(b, h, w, c)


# ------------------------------ main -----------------------------------------

if __name__ == "__main__":
    B, H, W, C = 2, 8, 8, 32
    NUM_HEADS = 4

    key = jax.random.PRNGKey(0)
    kx, kvi, kgi, kvg, kgg, kbg = jax.random.split(key, 6)

    x = jax.random.normal(kx, (B, H, W, C), dtype=jnp.float32)

    # weight_norm-parametrized Linear(d_model, 3*d_model, bias=False)
    v_in = 0.1 * jax.random.normal(kvi, (3 * C, C), dtype=jnp.float32)
    g_in = 1.0 + 0.1 * jax.random.normal(kgi, (3 * C,), dtype=jnp.float32)
    w_in = weight_norm_effective(v_in, g_in)        # (3C, C)

    # weight_norm-parametrized Linear(d_model, 2*d_model) with bias
    v_gate = 0.1 * jax.random.normal(kvg, (2 * C, C), dtype=jnp.float32)
    g_gate = 1.0 + 0.1 * jax.random.normal(kgg, (2 * C,), dtype=jnp.float32)
    w_gate = weight_norm_effective(v_gate, g_gate)  # (2C, C)
    b_gate = 0.1 * jax.random.normal(kbg, (2 * C,), dtype=jnp.float32)

    out = gated_attn(x, w_in, w_gate, b_gate, num_heads=NUM_HEADS)
    out = jax.block_until_ready(out)

    ref = gated_attn_ref(x, w_in, w_gate, b_gate, num_heads=NUM_HEADS)
    assert out.shape == (B, H, W, C)
    assert jnp.allclose(out, ref, atol=5e-4, rtol=5e-4), (
        float(jnp.max(jnp.abs(out - ref)))
    )

    print("KERNEL_OK")
</pallas_src>

<mosaic_0001>
module attributes {stable_mosaic.version = 11 : i64} {
  func.func @gated_attn_kernel(%arg0: memref<128x32xf32, #tpu.memory_space<vmem>>, %arg1: memref<32x128xf32, #tpu.memory_space<vmem>>, %arg2: memref<96x32xf32, #tpu.memory_space<vmem>>, %arg3: memref<64x32xf32, #tpu.memory_space<vmem>>, %arg4: memref<64x1xf32, #tpu.memory_space<vmem>>, %arg5: memref<32x128xf32, #tpu.memory_space<vmem>>) attributes {dimension_semantics = [], scalar_prefetch = 0 : i64, scratch_operands = 0 : i64, tpu.core_type = #tpu.core_type<tc>} {
    %c0 = arith.constant 0 : index
    %c0_0 = arith.constant 0 : index
    %0 = vector.load %arg0[%c0, %c0_0] : memref<128x32xf32, #tpu.memory_space<vmem>>, vector<128x32xf32>
    %1 = tpu.transpose %0, [1, 0] : vector<128x32xf32> -> vector<32x128xf32>
    %c0_1 = arith.constant 0 : index
    %c0_2 = arith.constant 0 : index
    %2 = vector.load %arg1[%c0_1, %c0_2] : memref<32x128xf32, #tpu.memory_space<vmem>>, vector<32x128xf32>
    %3 = arith.addf %1, %2 : vector<32x128xf32>
    %c0_3 = arith.constant 0 : index
    %c0_4 = arith.constant 0 : index
    %4 = vector.load %arg2[%c0_3, %c0_4] : memref<96x32xf32, #tpu.memory_space<vmem>>, vector<96x32xf32>
    %cst = arith.constant dense<0.000000e+00> : vector<96x128xf32>
    %5 = tpu.matmul %4, %3, %cst {dimension_numbers = #tpu.dot_dimension_numbers<[1], [0], [0], [1], [0, 0, 1, 1], [], []>} : vector<96x32xf32>, vector<32x128xf32>, vector<96x128xf32> -> vector<96x128xf32>
    %6 = vector.extract_strided_slice %5 {offsets = [0, 0], sizes = [32, 128], strides = [1, 1]} : vector<96x128xf32> to vector<32x128xf32>
    %7 = vector.extract_strided_slice %5 {offsets = [32, 0], sizes = [32, 128], strides = [1, 1]} : vector<96x128xf32> to vector<32x128xf32>
    %8 = vector.extract_strided_slice %5 {offsets = [64, 0], sizes = [32, 128], strides = [1, 1]} : vector<96x128xf32> to vector<32x128xf32>
    %9 = vector.shape_cast %8 : vector<32x128xf32> to vector<4x8x128xf32>
    %10 = vector.shape_cast %6 : vector<32x128xf32> to vector<4x8x128xf32>
    %11 = vector.shape_cast %7 : vector<32x128xf32> to vector<4x8x128xf32>
    %12 = tpu.transpose %9, [0, 2, 1] : vector<4x8x128xf32> -> vector<4x128x8xf32>
    %cst_5 = arith.constant dense<0.000000e+00> : vector<4x128x128xf32>
    %13 = tpu.matmul %12, %10, %cst_5 {dimension_numbers = #tpu.dot_dimension_numbers<[2], [1], [1], [2], [0, 0, 0, 1, 1, 2], [0], [0]>} : vector<4x128x8xf32>, vector<4x8x128xf32>, vector<4x128x128xf32> -> vector<4x128x128xf32>
    %14 = tpu.iota {dimensions = array<i32: 0>} : vector<128x1xi32>
    %15 = arith.sitofp %14 : vector<128x1xi32> to vector<128x1xf32>
    %16 = tpu.iota {dimensions = array<i32: 1>} : vector<1x128xi32>
    %17 = arith.sitofp %16 : vector<1x128xi32> to vector<1x128xf32>
    %cst_6 = arith.constant 5.000000e-01 : f32
    %18 = vector.broadcast %cst_6 : f32 to vector<128x1xf32>
    %19 = arith.addf %15, %18 : vector<128x1xf32>
    %cst_7 = arith.constant 1.562500e-02 : f32
    %20 = vector.broadcast %cst_7 : f32 to vector<128x1xf32>
    %21 = arith.mulf %19, %20 : vector<128x1xf32>
    %22 = math.floor %21 : vector<128x1xf32>
    %cst_8 = arith.constant 5.000000e-01 : f32
    %23 = vector.broadcast %cst_8 : f32 to vector<1x128xf32>
    %24 = arith.addf %17, %23 : vector<1x128xf32>
    %cst_9 = arith.constant 1.562500e-02 : f32
    %25 = vector.broadcast %cst_9 : f32 to vector<1x128xf32>
    %26 = arith.mulf %24, %25 : vector<1x128xf32>
    %27 = math.floor %26 : vector<1x128xf32>
    %28 = vector.broadcast %22 : vector<128x1xf32> to vector<128x128xf32>
    %29 = vector.broadcast %27 : vector<1x128xf32> to vector<128x128xf32>
    %30 = arith.cmpf oeq, %28, %29 : vector<128x128xf32>
    %31 = vector.shape_cast %30 : vector<128x128xi1> to vector<1x128x128xi1>
    %cst_10 = arith.constant -1.000000e+30 : f32
    %32 = vector.shape_cast %31 : vector<1x128x128xi1> to vector<1x128x128xi1>
    %33 = vector.broadcast %32 : vector<1x128x128xi1> to vector<4x128x128xi1>
    %34 = vector.broadcast %cst_10 : f32 to vector<4x128x128xf32>
    %35 = arith.select %33, %13, %34 : vector<4x128x128xi1>, vector<4x128x128xf32>
    %cst_11 = arith.constant dense<0xFF800000> : vector<4x128xf32>
    %36 = vector.multi_reduction <maximumf>, %35, %cst_11 [2] : vector<4x128x128xf32> to vector<4x128xf32>
    %37 = vector.shape_cast %36 : vector<4x128xf32> to vector<4x128x1xf32>
    %38 = vector.broadcast %37 : vector<4x128x1xf32> to vector<4x128x128xf32>
    %39 = arith.subf %35, %38 : vector<4x128x128xf32>
    %40 = math.exp %39 : vector<4x128x128xf32>
    %cst_12 = arith.constant dense<0.000000e+00> : vector<4x128xf32>
    %41 = vector.multi_reduction <add>, %40, %cst_12 [2] : vector<4x128x128xf32> to vector<4x128xf32>
    %42 = vector.shape_cast %41 : vector<4x128xf32> to vector<4x128x1xf32>
    %43 = tpu.reciprocal %42 {approx = true} : vector<4x128x1xf32> -> vector<4x128x1xf32>
    %44 = arith.mulf %42, %43 : vector<4x128x1xf32>
    %cst_13 = arith.constant 2.000000e+00 : f32
    %45 = vector.broadcast %cst_13 : f32 to vector<4x128x1xf32>
    %46 = arith.subf %45, %44 : vector<4x128x1xf32>
    %47 = arith.mulf %43, %46 : vector<4x128x1xf32>
    %48 = vector.broadcast %47 : vector<4x128x1xf32> to vector<4x128x128xf32>
    %49 = arith.mulf %40, %48 : vector<4x128x128xf32>
    %cst_14 = arith.constant dense<0.000000e+00> : vector<4x8x128xf32>
    %50 = tpu.matmul %11, %49, %cst_14 {dimension_numbers = #tpu.dot_dimension_numbers<[2], [2], [1], [1], [0, 0, 0, 1, 1, 1], [0], [0]>} : vector<4x8x128xf32>, vector<4x128x128xf32>, vector<4x8x128xf32> -> vector<4x8x128xf32>
    %51 = vector.shape_cast %50 : vector<4x8x128xf32> to vector<32x128xf32>
    %c0_15 = arith.constant 0 : index
    %c0_16 = arith.constant 0 : index
    %52 = vector.load %arg3[%c0_15, %c0_16] : memref<64x32xf32, #tpu.memory_space<vmem>>, vector<64x32xf32>
    %cst_17 = arith.constant dense<0.000000e+00> : vector<64x128xf32>
    %53 = tpu.matmul %52, %51, %cst_17 {dimension_numbers = #tpu.dot_dimension_numbers<[1], [0], [0], [1], [0, 0, 1, 1], [], []>} : vector<64x32xf32>, vector<32x128xf32>, vector<64x128xf32> -> vector<64x128xf32>
    %c0_18 = arith.constant 0 : index
    %c0_19 = arith.constant 0 : index
    %54 = vector.load %arg4[%c0_18, %c0_19] : memref<64x1xf32, #tpu.memory_space<vmem>>, vector<64x1xf32>
    %55 = vector.broadcast %54 : vector<64x1xf32> to vector<64x128xf32>
    %56 = arith.addf %53, %55 : vector<64x128xf32>
    %57 = vector.extract_strided_slice %56 {offsets = [0, 0], sizes = [32, 128], strides = [1, 1]} : vector<64x128xf32> to vector<32x128xf32>
    %58 = vector.extract_strided_slice %56 {offsets = [32, 0], sizes = [32, 128], strides = [1, 1]} : vector<64x128xf32> to vector<32x128xf32>
    %59 = arith.negf %58 : vector<32x128xf32>
    %60 = math.exp %59 : vector<32x128xf32>
    %cst_20 = arith.constant 1.000000e+00 : f32
    %61 = vector.broadcast %cst_20 : f32 to vector<32x128xf32>
    %62 = arith.addf %61, %60 : vector<32x128xf32>
    %63 = arith.divf %61, %62 : vector<32x128xf32>
    %64 = arith.mulf %57, %63 : vector<32x128xf32>
    %c0_21 = arith.constant 0 : index
    %c0_22 = arith.constant 0 : index
    %65 = vector.load %arg5[%c0_21, %c0_22] : memref<32x128xf32, #tpu.memory_space<vmem>>, vector<32x128xf32>
    tpu.vector_store %arg5[%c0_21, %c0_22], %64 {strides = array<i32>} : memref<32x128xf32, #tpu.memory_space<vmem>>, vector<32x128xf32>,
    return
  }
}

</mosaic_0001>

<bundles_post_ra>
// kernel: tpu_custom_call.1
= control target key start
LH: loop header
LB: loop body
LE: loop exit
PB: predicated region body
PF: predicated region fallthrough
CT: control target
= control target key end

     0   :  { %s3741_s0 = inlined_call_operand.vmem [shape: f32[128,32], index: 0, kind: input, shape index: {}]   ;;  %s3742_s1 = inlined_call_operand.vmem [shape: f32[32,128], index: 1, kind: input, shape index: {}]   ;;  %s3743_s2 = inlined_call_operand.vmem [shape: f32[96,32], index: 2, kind: input, shape index: {}]   ;;  %s3744_s3 = inlined_call_operand.vmem [shape: f32[64,32], index: 3, kind: input, shape index: {}]   ;;  %s3745_s4 = inlined_call_operand.vmem [shape: f32[64,1], index: 4, kind: input, shape index: {}]   ;;  %s3746_s5 = inlined_call_operand.hbm [shape: f32[32,128], index: 5, kind: output, shape index: {}]  }
   0x1   :  { %v21_v0 = vld [vmem:[%s3741_s0] sm:$0xff] }
   0x2   :  { %37 = vxpose.xlu0.b32.start [1/16] (narrow) %v21_v0, 32 }
   0x3   :  { %10 = vsyncpa [#allocation3], 0  ;;  %v22_v1 = vld [vmem:[%s3741_s0 + $0x8] sm:$0xff]  ;;  %v23_v2 = vld [vmem:[%s3741_s0 + $0x10] sm:$0xff]  ;;  %vm89_vm0 = vcmask 261120   ;;  %vm307_vm1 = vcmask 64512  }
   0x4   :  { %v24_v3 = vld [vmem:[%s3741_s0 + $0x18] sm:$0xff]  ;;  %v25_v4 = vld [vmem:[%s3741_s0 + $0x20] sm:$0xff]  ;;  %v26_v5 = vld [vmem:[%s3741_s0 + $0x28] sm:$0xff]  ;;  %s2018_s9 = sshll.u32 %s3746_s5, 4  ;;  %s2430_s10 = smov 128   ;;  %s2019_s9 = int_to_ptr.hbm [resolvable:$true] %s2018_s9 }
   0x5   :  { %v27_v6 = vld [vmem:[%s3741_s0 + $0x30] sm:$0xff]  ;;  %v28_v7 = vld [vmem:[%s3741_s0 + $0x38] sm:$0xff]  ;;  %v29_v8 = vld [vmem:[%s3741_s0 + $0x40] sm:$0xff] }
   0x6   :  { %v30_v9 = vld [vmem:[%s3741_s0 + $0x48] sm:$0xff]  ;;  %v31_v10 = vld [vmem:[%s3741_s0 + $0x50] sm:$0xff]  ;;  %v32_v11 = vld [vmem:[%s3741_s0 + $0x58] sm:$0xff] }
   0x7   :  { %v33_v12 = vld [vmem:[%s3741_s0 + $0x60] sm:$0xff]  ;;  %v34_v13 = vld [vmem:[%s3741_s0 + $0x68] sm:$0xff]  ;;  %v35_v14 = vld [vmem:[%s3741_s0 + $0x70] sm:$0xff] }
   0x8   :  { %v36_v15 = vld [vmem:[%s3741_s0 + $0x78] sm:$0xff]  ;;  %v71_v21 = vld [vmem:[%s3742_s1 + $0x10] sm:$0xff]  ;;  %v70_v23 = vld [vmem:[%s3742_s1 + $0x8] sm:$0xff] }
   0x9   :  { %v72_v19 = vld [vmem:[%s3742_s1 + $0x18] sm:$0xff]  ;;  %v69_v25 = vld [vmem:[%s3742_s1] sm:$0xff]  ;;  %v86_v29 = vld [vmem:[%s3743_s2 + $0x48] sm:$0xff]  ;;  %s2431_s1 = smov 8  }
   0xa   :  { %38 = vxpose.xlu0.b32.cont [2/16] (narrow) %v22_v1, 32  ;;  %v85_v28 = vld [vmem:[%s3743_s2 + $0x40] sm:$0xff]  ;;  %v87_v30 = vld [vmem:[%s3743_s2 + $0x50] sm:$0xff]  ;;  %v88_v31 = vld [vmem:[%s3743_s2 + $0x58] sm:$0xff] }
   0xb   :  { %v77_v32 = vld [vmem:[%s3743_s2] sm:$0xff]  ;;  %v78_v33 = vld [vmem:[%s3743_s2 + $0x8] sm:$0xff]  ;;  %v79_v36 = vld [vmem:[%s3743_s2 + $0x10] sm:$0xff] }
   0xc   :  { %v80_v38 = vld [vmem:[%s3743_s2 + $0x18] sm:$0xff]  ;;  %v81_v59 = vld [vmem:[%s3743_s2 + $0x20] sm:$0xff]  ;;  %v82_v62 = vld [vmem:[%s3743_s2 + $0x28] sm:$0xff] }
   0xd   :  { %v83_v1 = vld [vmem:[%s3743_s2 + $0x30] sm:$0xff] }
  0x12   :  { %39 = vxpose.xlu0.b32.cont [3/16] (narrow) %v23_v2, 32 }
  0x1a   :  { %40 = vxpose.xlu0.b32.cont [4/16] (narrow) %v24_v3, 32 }
  0x22   :  { %41 = vxpose.xlu0.b32.cont [5/16] (narrow) %v25_v4, 32 }
  0x2a   :  { %42 = vxpose.xlu0.b32.cont [6/16] (narrow) %v26_v5, 32  ;;  %v84_v5 = vld [vmem:[%s3743_s2 + $0x38] sm:$0xff] }
  0x32   :  { %43 = vxpose.xlu0.b32.cont [7/16] (narrow) %v27_v6, 32 }
  0x3a   :  { %44 = vxpose.xlu0.b32.cont [8/16] (narrow) %v28_v7, 32 }
  0x42   :  { %45 = vxpose.xlu0.b32.cont [9/16] (narrow) %v29_v8, 32 }
  0x4a   :  { %46 = vxpose.xlu0.b32.cont [10/16] (narrow) %v30_v9, 32 }
  0x52   :  { %47 = vxpose.xlu0.b32.cont [11/16] (narrow) %v31_v10, 32 }
  0x5a   :  { %48 = vxpose.xlu0.b32.cont [12/16] (narrow) %v32_v11, 32 }
  0x62   :  { %49 = vxpose.xlu0.b32.cont [13/16] (narrow) %v33_v12, 32  ;;  %v760_v12 = vlaneseq }
  0x6a   :  { %50 = vxpose.xlu0.b32.cont [14/16] (narrow) %v34_v13, 32 }
  0x72   :  { %51 = vxpose.xlu0.b32.cont [15/16] (narrow) %v35_v14, 32  ;;  %v2599_v14 = vshrl.u32 %v760_v12, 7 }
  0x7a   :  { %52 = vxpose.xlu0.b32.end [16/16] (narrow) %v36_v15, 32 }
  0xa6   :  { %v53_v16 = vpop.trf.xlu0 }
  0xa7   :  { %v73_v27 = vadd.f32 %v69_v25, %v53_v16  ;;  %v762_v16 = vadd.s32 8, %v2599_v14 }
  0xae   :  { %v54_v17 = vpop.trf.xlu0 }
  0xaf   :  { %v74_v26 = vadd.f32 %v70_v23, %v54_v17  ;;  %v794_v17 = vand.u32 127, %v760_v12  ;;  %v763_v23 = vadd.s32 16, %v2599_v14 }
  0xb6   :  { %v55_v18 = vpop.trf.xlu0 }
  0xb7   :  { %v75_v24 = vadd.f32 %v71_v21, %v55_v18  ;;  %v778_v18 = vcvt.s32.f32 %v762_v16 }
  0xbe   :  { %v56_v20 = vpop.trf.xlu0 }
  0xbf   :  { %v76_v22 = vadd.f32 %v72_v19, %v56_v20  ;;  %v795_v20 = vcvt.s32.f32 %v794_v17 }
  0xc1   :  { %138 = vmatpush.msra.mxu0 %v76_v22  ;;  %2118 = vmatpush.msra.mxu3 %v76_v22  ;;  %v797_v22 = vadd.f32 0.5, %v778_v18 }
  0xc3   :  { %139 = vmatpush.msra.mxu0 %v75_v24  ;;  %2119 = vmatpush.msra.mxu3 %v75_v24  ;;  %v844_v24 = vadd.f32 0.5, %v795_v20  ;;  %v813_v25 = vmul.f32 0.015625, %v797_v22  ;;  %v764_v20 = vadd.s32 24, %v2599_v14 }
  0xc5   :  { %140 = vmatpush.msra.mxu0 %v74_v26  ;;  %2120 = vmatpush.msra.mxu3 %v74_v26  ;;  %v779_v26 = vcvt.s32.f32 %v763_v23  ;;  %v780_v23 = vcvt.s32.f32 %v764_v20 }
  0xc7   :  { %141 = vmatpush.msra.mxu0 %v73_v27  ;;  %2121 = vmatpush.msra.mxu3 %v73_v27 }
  0xc8   :  { %2038 = vmatmul.msk.f32.vlgmr.msra.gmra.mxu3 %vm89_vm0, %v85_v28  ;;  %2030 = vmatmul.msk.f32.vlgmr.msra.gmra.mxu0 %vm89_vm0, %v77_v32  ;;  %v798_v32 = vadd.f32 0.5, %v779_v26 }
  0xd0   :  { %2039 = vmatmul.msk.f32.gmra.mxu3 %vm89_vm0, %v86_v29  ;;  %2031 = vmatmul.msk.f32.gmra.mxu0 %vm89_vm0, %v78_v33  ;;  %v845_v29 = vmul.f32 0.015625, %v844_v24 }
  0xd2   :  { %v2608_v33 = vfloor.f32 %v845_v29 }
  0xd8   :  { %2040 = vmatmul.msk.f32.gmra.mxu3 %vm89_vm0, %v87_v30  ;;  %2032 = vmatmul.msk.f32.gmra.mxu0 %vm89_vm0, %v79_v36 }
  0xe0   :  { %2041 = vmatmul.msk.f32.gmra.mxu3 %vm89_vm0, %v88_v31  ;;  %2033 = vmatmul.msk.f32.gmra.mxu0 %vm89_vm0, %v80_v38  ;;  %v829_v31 = vfloor.f32 %v813_v25 }
  0xe2   :  { %vm2611_vm2 = vcmp.eq.f32.partialorder %v829_v31, %v2608_v33 }
  0xe8   :  { %2034 = vmatmul.msk.f32.gmra.mxu0 %vm89_vm0, %v81_v59 }
  0xf0   :  { %2035 = vmatmul.msk.f32.gmra.mxu0 %vm89_vm0, %v82_v62 }
  0xf8   :  { %2036 = vmatmul.msk.f32.gmra.mxu0 %vm89_vm0, %v83_v1 }
 0x100   :  { %2037 = vmatmul.msk.f32.gmra.mxu0 %vm89_vm0, %v84_v5 }
 0x145   :  { %v143_v39 = vpop.f32.mrf.mxu0 }
 0x146   :  { %371 = vmatpush.msra.mxu1 %v143_v39 }
 0x14b   :  { %v167_v34 = vpop.f32.mrf.mxu3 }
 0x14c   :  { %179 = vxpose.xlu1.b32.start.end [1/1] (short) %v167_v34, 128 }
 0x14d   :  { %v146_v41 = vpop.f32.mrf.mxu0 }
 0x14e   :  { %484 = vmatpush.msra.mxu2 %v146_v41 }
 0x153   :  { %v170_v35 = vpop.f32.mrf.mxu3 }
 0x154   :  { %211 = vxpose.xlu2.b32.start.end [1/1] (short) %v170_v35, 128  ;;  %v814_v35 = vmul.f32 0.015625, %v798_v32 }
 0x155   :  { %v149_v3 = vpop.f32.mrf.mxu0 }
 0x156   :  { %597 = vmatpush.msrb.mxu3 %v149_v3  ;;  %v830_v41 = vfloor.f32 %v814_v35 }
 0x158   :  { %vm2623_vm3 = vcmp.eq.f32.partialorder %v830_v41, %v2608_v33 }
 0x15b   :  { %v173_v37 = vpop.f32.mrf.mxu3 }
 0x15d   :  { %v152_v7 = vpop.f32.mrf.mxu0 }
 0x15e   :  { %710 = vmatpush.msrb.mxu0 %v152_v7 }
 0x163   :  { %v176_v40 = vpop.f32.mrf.mxu3 }
 0x1cc   :  { %243 = vxpose.xlu1.b32.start.end [1/1] (short) %v173_v37, 128 }
 0x1d4   :  { %275 = vxpose.xlu2.b32.start.end [1/1] (short) %v176_v40, 128 }
 0x1ed   :  { %v227_v42 = vpop.trf.xlu2 }
 0x1ee   :  { %2058 = vmatmul.msk.f32.vlgmr.msra.gmra.mxu2 %vm307_vm1, %v227_v42 }
 0x1f0   :  { %v195_v43 = vpop.trf.xlu1 }
 0x1f1   :  { %2042 = vmatmul.msk.f32.vlgmr.msra.gmra.mxu1 %vm307_vm1, %v195_v43 }
 0x1f5   :  { %v228_v44 = vpop.trf.xlu2 }
 0x1f6   :  { %2059 = vmatmul.msk.f32.gmra.mxu2 %vm307_vm1, %v228_v44 }
 0x1f8   :  { %v196_v45 = vpop.trf.xlu1 }
 0x1f9   :  { %2043 = vmatmul.msk.f32.gmra.mxu1 %vm307_vm1, %v196_v45 }
 0x1fd   :  { %v229_v46 = vpop.trf.xlu2 }
 0x1fe   :  { %2060 = vmatmul.msk.f32.gmra.mxu2 %vm307_vm1, %v229_v46 }
 0x200   :  { %v197_v47 = vpop.trf.xlu1 }
 0x201   :  { %2044 = vmatmul.msk.f32.gmra.mxu1 %vm307_vm1, %v197_v47 }
 0x205   :  { %v230_v48 = vpop.trf.xlu2 }
 0x206   :  { %2061 = vmatmul.msk.f32.gmra.mxu2 %vm307_vm1, %v230_v48 }
 0x208   :  { %v198_v49 = vpop.trf.xlu1 }
 0x209   :  { %2045 = vmatmul.msk.f32.gmra.mxu1 %vm307_vm1, %v198_v49 }
 0x20d   :  { %v231_v50 = vpop.trf.xlu2 }
 0x20e   :  { %2062 = vmatmul.msk.f32.gmra.mxu2 %vm307_vm1, %v231_v50 }
 0x210   :  { %v199_v51 = vpop.trf.xlu1 }
 0x211   :  { %2046 = vmatmul.msk.f32.gmra.mxu1 %vm307_vm1, %v199_v51 }
 0x215   :  { %v232_v52 = vpop.trf.xlu2 }
 0x216   :  { %2063 = vmatmul.msk.f32.gmra.mxu2 %vm307_vm1, %v232_v52 }
 0x218   :  { %v200_v53 = vpop.trf.xlu1 }
 0x219   :  { %2047 = vmatmul.msk.f32.gmra.mxu1 %vm307_vm1, %v200_v53  ;;  %v777_v53 = vcvt.s32.f32 %v2599_v14 }
 0x21d   :  { %v233_v54 = vpop.trf.xlu2 }
 0x21e   :  { %2064 = vmatmul.msk.f32.gmra.mxu2 %vm307_vm1, %v233_v54  ;;  %v796_v54 = vadd.f32 0.5, %v777_v53 }
 0x220   :  { %v201_v55 = vpop.trf.xlu1 }
 0x221   :  { %2048 = vmatmul.msk.f32.gmra.mxu1 %vm307_vm1, %v201_v55 }
 0x225   :  { %v234_v56 = vpop.trf.xlu2 }
 0x226   :  { %2065 = vmatmul.msk.f32.gmra.mxu2 %vm307_vm1, %v234_v56 }
 0x228   :  { %v202_v57 = vpop.trf.xlu1 }
 0x229   :  { %2049 = vmatmul.msk.f32.gmra.mxu1 %vm307_vm1, %v202_v57  ;;  %v812_v57 = vmul.f32 0.015625, %v796_v54 }
 0x22d   :  { %v235_v58 = vpop.trf.xlu2 }
 0x22e   :  { %2066 = vmatmul.msk.f32.gmra.mxu2 %vm307_vm1, %v235_v58  ;;  %v828_v58 = vfloor.f32 %v812_v57 }
 0x230   :  { %v203_v60 = vpop.trf.xlu1  ;;  %vm2648_vm4 = vcmp.eq.f32.partialorder %v828_v58, %v2608_v33 }
 0x231   :  { %2050 = vmatmul.msk.f32.gmra.mxu1 %vm307_vm1, %v203_v60 }
 0x235   :  { %v236_v61 = vpop.trf.xlu2 }
 0x236   :  { %2067 = vmatmul.msk.f32.gmra.mxu2 %vm307_vm1, %v236_v61 }
 0x238   :  { %v204_v63 = vpop.trf.xlu1 }
 0x239   :  { %2051 = vmatmul.msk.f32.gmra.mxu1 %vm307_vm1, %v204_v63 }
 0x23d   :  { %v237_v0 = vpop.trf.xlu2 }
 0x23e   :  { %2068 = vmatmul.msk.f32.gmra.mxu2 %vm307_vm1, %v237_v0 }
 0x240   :  { %v205_v2 = vpop.trf.xlu1 }
 0x241   :  { %2052 = vmatmul.msk.f32.gmra.mxu1 %vm307_vm1, %v205_v2 }
 0x245   :  { %v238_v4 = vpop.trf.xlu2 }
 0x246   :  { %2069 = vmatmul.msk.f32.gmra.mxu2 %vm307_vm1, %v238_v4 }
 0x248   :  { %v206_v6 = vpop.trf.xlu1 }
 0x249   :  { %2053 = vmatmul.msk.f32.gmra.mxu1 %vm307_vm1, %v206_v6 }
 0x24d   :  { %v239_v8 = vpop.trf.xlu2 }
 0x24e   :  { %2070 = vmatmul.msk.f32.gmra.mxu2 %vm307_vm1, %v239_v8  ;;  %v2671_v8 = vpop.f32.mrf.mxu0 }
 0x24f   :  { %3820 = vst [vmem:[#allocation10_spill] sm:$0xff] %v2671_v8 }
 0x250   :  { %v207_v9 = vpop.trf.xlu1 }
 0x251   :  { %2054 = vmatmul.msk.f32.gmra.mxu1 %vm307_vm1, %v207_v9 }
 0x255   :  { %v240_v10 = vpop.trf.xlu2 }
 0x256   :  { %2071 = vmatmul.msk.f32.gmra.mxu2 %vm307_vm1, %v240_v10  ;;  %v2674_v10 = vpop.f32.mrf.mxu0 }
 0x257   :  { %3821 = vst [vmem:[#allocation11_spill] sm:$0xff] %v2674_v10 }
 0x258   :  { %v208_v11 = vpop.trf.xlu1 }
 0x259   :  { %2055 = vmatmul.msk.f32.gmra.mxu1 %vm307_vm1, %v208_v11 }
 0x25d   :  { %v241_v13 = vpop.trf.xlu2 }
 0x25e   :  { %2072 = vmatmul.msk.f32.gmra.mxu2 %vm307_vm1, %v241_v13  ;;  %v2677_v12 = vpop.f32.mrf.mxu0 }
 0x25f   :  { %3822 = vst [vmem:[#allocation12_spill] sm:$0xff] %v2677_v12 }
 0x260   :  { %v209_v15 = vpop.trf.xlu1 }
 0x261   :  { %2056 = vmatmul.msk.f32.gmra.mxu1 %vm307_vm1, %v209_v15 }
 0x265   :  { %v242_v19 = vpop.trf.xlu2 }
 0x266   :  { %2073 = vmatmul.msk.f32.gmra.mxu2 %vm307_vm1, %v242_v19  ;;  %v2682_v17 = vpop.f32.mrf.mxu0  ;;  %v766_v19 = vadd.s32 40, %v2599_v14 }
 0x267   :  { %3823 = vst [vmem:[#allocation13_spill] sm:$0xff] %v2682_v17 }
 0x268   :  { %v210_v21 = vpop.trf.xlu1  ;;  %v782_v22 = vcvt.s32.f32 %v766_v19 }
 0x269   :  { %2057 = vmatmul.msk.f32.gmra.mxu1 %vm307_vm1, %v210_v21 }
 0x26a   :  { %v801_v26 = vadd.f32 0.5, %v782_v22 }
 0x26c   :  { %v817_v31 = vmul.f32 0.015625, %v801_v26 }
 0x26d   :  { %v291_v27 = vpop.trf.xlu2 }
 0x26e   :  { %v373_v28 = vpop.f32.mrf.mxu1  ;;  %2090 = vmatmul.msk.f32.vlgmr.msrb.gmra.mxu0 %vm307_vm1, %v291_v27  ;;  %v799_v27 = vadd.f32 0.5, %v780_v23 }
 0x26f   :  { %v2655_v62 = vsel %vm2648_vm4, %v373_v28, -1e+30  ;;  %v765_v28 = vadd.s32 32, %v2599_v14 }
 0x270   :  { %v259_v30 = vpop.trf.xlu1  ;;  %3818 = vst [vmem:[#allocation8_spill] sm:$0xff] %v2655_v62  ;;  %v815_v32 = vmul.f32 0.015625, %v799_v27 }
 0x271   :  { %2074 = vmatmul.msk.f32.vlgmr.msrb.gmra.mxu3 %vm307_vm1, %v259_v30  ;;  %v486_v40 = vpop.f32.mrf.mxu2  ;;  %v781_v35 = vcvt.s32.f32 %v765_v28 }
 0x272   :  { %v2666_v5 = vsel %vm2648_vm4, %v486_v40, -1e+30 }
 0x273   :  { %3819 = vst [vmem:[#allocation9_spill] sm:$0xff] %v2666_v5 }
 0x275   :  { %v292_v36 = vpop.trf.xlu2 }
 0x276   :  { %v376_v37 = vpop.f32.mrf.mxu1  ;;  %2091 = vmatmul.msk.f32.gmra.mxu0 %vm307_vm1, %v292_v36 }
 0x277   :  { %v2618_v38 = vsel %vm2611_vm2, %v376_v37, -1e+30 }
 0x278   :  { %3811 = vst [vmem:[#allocation5_spill] sm:$0xff] %v2618_v38  ;;  %v260_v39 = vpop.trf.xlu1  ;;  %961 = vmax.xlane.f32.xlu0 %v2618_v38 }
 0x279   :  { %2075 = vmatmul.msk.f32.gmra.mxu3 %vm307_vm1, %v260_v39  ;;  %v489_v47 = vpop.f32.mrf.mxu2 }
 0x27a   :  { %v2636_v49 = vsel %vm2611_vm2, %v489_v47, -1e+30 }
 0x27b   :  { %3815 = vst [vmem:[#allocation7_spill] sm:$0xff] %v2636_v49 }
 0x27d   :  { %v293_v43 = vpop.trf.xlu2 }
 0x27e   :  { %v379_v44 = vpop.f32.mrf.mxu1  ;;  %2092 = vmatmul.msk.f32.gmra.mxu0 %vm307_vm1, %v293_v43  ;;  %v833_v43 = vfloor.f32 %v817_v31 }
 0x27f   :  { %v2630_v45 = vsel %vm2623_vm3, %v379_v44, -1e+30  ;;  %v831_v44 = vfloor.f32 %v815_v32 }
 0x280   :  { %3814 = vst [vmem:[#allocation6_spill] sm:$0xff] %v2630_v45  ;;  %v261_v46 = vpop.trf.xlu1  ;;  %963 = vmax.xlane.f32.xlu0 %v2630_v45  ;;  %vm2705_vm5 = vcmp.eq.f32.partialorder %v833_v43, %v2608_v33 }
 0x281   :  { %2076 = vmatmul.msk.f32.gmra.mxu3 %vm307_vm1, %v261_v46  ;;  %v492_v37 = vpop.f32.mrf.mxu2  ;;  %v800_v46 = vadd.f32 0.5, %v781_v35  ;;  %vm2710_vm6 = vcmp.eq.f32.partialorder %v831_v44, %v2608_v33  ;;  %v770_v44 = vadd.s32 72, %v2599_v14 }
 0x285   :  { %v294_v48 = vpop.trf.xlu2 }
 0x286   :  { %2093 = vmatmul.msk.f32.gmra.mxu0 %vm307_vm1, %v294_v48  ;;  %v382_v18 = vpop.f32.mrf.mxu1 }
 0x288   :  { %v262_v50 = vpop.trf.xlu1  ;;  %993 = vmax.xlane.f32.xlu0 %v2636_v49 }
 0x289   :  { %2077 = vmatmul.msk.f32.gmra.mxu3 %vm307_vm1, %v262_v50  ;;  %v495_v58 = vpop.f32.mrf.mxu2 }
 0x28d   :  { %v295_v51 = vpop.trf.xlu2 }
 0x28e   :  { %2094 = vmatmul.msk.f32.gmra.mxu0 %vm307_vm1, %v295_v51  ;;  %v385_v30 = vpop.f32.mrf.mxu1 }
 0x290   :  { %v263_v52 = vpop.trf.xlu1 }
 0x291   :  { %2078 = vmatmul.msk.f32.gmra.mxu3 %vm307_vm1, %v263_v52  ;;  %v816_v52 = vmul.f32 0.015625, %v800_v46 }
 0x295   :  { %v296_v55 = vpop.trf.xlu2 }
 0x296   :  { %2095 = vmatmul.msk.f32.gmra.mxu0 %vm307_vm1, %v296_v55  ;;  %v388_v47 = vpop.f32.mrf.mxu1 }
 0x297   :  { %v2717_v55 = vsel %vm2705_vm5, %v388_v47, -1e+30 }
 0x298   :  { %v264_v56 = vpop.trf.xlu1 }
 0x299   :  { %2079 = vmatmul.msk.f32.gmra.mxu3 %vm307_vm1, %v264_v56  ;;  %v2722_v56 = vsel %vm2710_vm6, %v382_v18, -1e+30  ;;  %v767_v18 = vadd.s32 48, %v2599_v14 }
 0x29b   :  { %v783_v26 = vcvt.s32.f32 %v767_v18 }
 0x29d   :  { %v297_v59 = vpop.trf.xlu2 }
 0x29e   :  { %2096 = vmatmul.msk.f32.gmra.mxu0 %vm307_vm1, %v297_v59  ;;  %v832_v59 = vfloor.f32 %v816_v52 }
 0x2a0   :  { %v265_v60 = vpop.trf.xlu1  ;;  %vm2731_vm7 = vcmp.eq.f32.partialorder %v832_v59, %v2608_v33 }
 0x2a1   :  { %2080 = vmatmul.msk.f32.gmra.mxu3 %vm307_vm1, %v265_v60 }
 0x2a4   :  { %959 = vmax.xlane.f32.xlu1 %v2655_v62 }
 0x2a5   :  { %v298_v63 = vpop.trf.xlu2 }
 0x2a6   :  { %2097 = vmatmul.msk.f32.gmra.mxu0 %vm307_vm1, %v298_v63 }
 0x2a8   :  { %v266_v0 = vpop.trf.xlu1 }
 0x2a9   :  { %2081 = vmatmul.msk.f32.gmra.mxu3 %vm307_vm1, %v266_v0 }
 0x2ad   :  { %v299_v1 = vpop.trf.xlu2 }
 0x2ae   :  { %2098 = vmatmul.msk.f32.gmra.mxu0 %vm307_vm1, %v299_v1  ;;  %v2743_v1 = vsel %vm2623_vm3, %v492_v37, -1e+30 }
 0x2af   :  { %3835 = vst [vmem:[#allocation19_spill] sm:$0xff] %v2743_v1 }
 0x2b0   :  { %v267_v2 = vpop.trf.xlu1 }
 0x2b1   :  { %2082 = vmatmul.msk.f32.gmra.mxu3 %vm307_vm1, %v267_v2  ;;  %v2747_v2 = vsel %vm2731_vm7, %v385_v30, -1e+30  ;;  %v802_v30 = vadd.f32 0.5, %v783_v26  ;;  %v771_v26 = vadd.s32 80, %v2599_v14 }
 0x2b3   :  { %v818_v43 = vmul.f32 0.015625, %v802_v30 }
 0x2b5   :  { %v300_v3 = vpop.trf.xlu2  ;;  %v834_v52 = vfloor.f32 %v818_v43 }
 0x2b6   :  { %2099 = vmatmul.msk.f32.gmra.mxu0 %vm307_vm1, %v300_v3  ;;  %v768_v3 = vadd.s32 56, %v2599_v14 }
 0x2b7   :  { %vm2810_vm9 = vcmp.eq.f32.partialorder %v834_v52, %v2608_v33 }
 0x2b8   :  { %v268_v4 = vpop.trf.xlu1 }
 0x2b9   :  { %2083 = vmatmul.msk.f32.gmra.mxu3 %vm307_vm1, %v268_v4  ;;  %v498_v4 = vpop.f32.mrf.mxu2 }
 0x2bd   :  { %991 = vmax.xlane.f32.xlu2 %v2666_v5  ;;  %v301_v6 = vpop.trf.xlu2 }
 0x2be   :  { %2100 = vmatmul.msk.f32.gmra.mxu0 %vm307_vm1, %v301_v6 }
 0x2c0   :  { %v269_v7 = vpop.trf.xlu1 }
 0x2c1   :  { %2084 = vmatmul.msk.f32.gmra.mxu3 %vm307_vm1, %v269_v7  ;;  %v784_v7 = vcvt.s32.f32 %v768_v3  ;;  %v501_v19 = vpop.f32.mrf.mxu2 }
 0x2c2   :  { %v2766_v22 = vsel %vm2705_vm5, %v501_v19, -1e+30 }
 0x2c3   :  { %3838 = vst [vmem:[#allocation22_spill] sm:$0xff] %v2766_v22 }
 0x2c5   :  { %v302_v15 = vpop.trf.xlu2 }
 0x2c6   :  { %2101 = vmatmul.msk.f32.gmra.mxu0 %vm307_vm1, %v302_v15  ;;  %v803_v15 = vadd.f32 0.5, %v784_v7  ;;  %v774_v7 = vadd.s32 104, %v2599_v14 }
 0x2c8   :  { %v270_v9 = vpop.trf.xlu1  ;;  %v819_v20 = vmul.f32 0.015625, %v803_v15  ;;  %v790_v12 = vcvt.s32.f32 %v774_v7 }
 0x2c9   :  { %2085 = vmatmul.msk.f32.gmra.mxu3 %vm307_vm1, %v270_v9 }
 0x2ca   :  { %v835_v28 = vfloor.f32 %v819_v20 }
 0x2cc   :  { %vm2781_vm8 = vcmp.eq.f32.partialorder %v835_v28, %v2608_v33 }
 0x2cd   :  { %v303_v29 = vpop.trf.xlu2 }
 0x2ce   :  { %2102 = vmatmul.msk.f32.gmra.mxu0 %vm307_vm1, %v303_v29  ;;  %v769_v29 = vadd.s32 64, %v2599_v14 }
 0x2d0   :  { %v271_v11 = vpop.trf.xlu1  ;;  %v785_v32 = vcvt.s32.f32 %v769_v29 }
 0x2d1   :  { %2086 = vmatmul.msk.f32.gmra.mxu3 %vm307_vm1, %v271_v11 }
 0x2d2   :  { %v804_v46 = vadd.f32 0.5, %v785_v32 }
 0x2d5   :  { %v304_v50 = vpop.trf.xlu2 }
 0x2d6   :  { %2103 = vmatmul.msk.f32.gmra.mxu0 %vm307_vm1, %v304_v50  ;;  %v504_v50 = vpop.f32.mrf.mxu2 }
 0x2d8   :  { %v272_v13 = vpop.trf.xlu1 }
 0x2d9   :  { %2087 = vmatmul.msk.f32.gmra.mxu3 %vm307_vm1, %v272_v13  ;;  %v2759_v13 = vsel %vm2710_vm6, %v495_v58, -1e+30  ;;  %v820_v58 = vmul.f32 0.015625, %v804_v46 }
 0x2da   :  { %3837 = vst [vmem:[#allocation21_spill] sm:$0xff] %v2759_v13 }
 0x2db   :  { %v836_v3 = vfloor.f32 %v820_v58 }
 0x2dd   :  { %v305_v60 = vpop.trf.xlu2  ;;  %vm2822_vm10 = vcmp.eq.f32.partialorder %v836_v3, %v2608_v33 }
 0x2de   :  { %2104 = vmatmul.msk.f32.gmra.mxu0 %vm307_vm1, %v305_v60 }
 0x2e0   :  { %v273_v16 = vpop.trf.xlu1 }
 0x2e1   :  { %2088 = vmatmul.msk.f32.gmra.mxu3 %vm307_vm1, %v273_v16  ;;  %v391_v16 = vpop.f32.mrf.mxu1 }
 0x2e2   :  { %v2832_v19 = vsel %vm2810_vm9, %v391_v16, -1e+30  ;;  %v787_v16 = vcvt.s32.f32 %v771_v26 }
 0x2e4   :  { %v806_v46 = vadd.f32 0.5, %v787_v16 }
 0x2e5   :  { %v306_v6 = vpop.trf.xlu2 }
 0x2e6   :  { %2105 = vmatmul.msk.f32.gmra.mxu0 %vm307_vm1, %v306_v6  ;;  %v507_v6 = vpop.f32.mrf.mxu2 }
 0x2e8   :  { %v274_v21 = vpop.trf.xlu1 }
 0x2e9   :  { %2089 = vmatmul.msk.f32.gmra.mxu3 %vm307_vm1, %v274_v21  ;;  %v394_v31 = vpop.f32.mrf.mxu1 }
 0x2ea   :  { %v2791_v37 = vsel %vm2781_vm8, %v394_v31, -1e+30 }
 0x2eb   :  { %v712_v24 = vpop.f32.mrf.mxu0 }
 0x2ec   :  { %v2689_v25 = vsel %vm2648_vm4, %v712_v24, -1e+30 }
 0x2ed   :  { %3824 = vst [vmem:[#allocation14_spill] sm:$0xff] %v2689_v25  ;;  %1055 = vmax.xlane.f32.xlu1 %v2689_v25 }
 0x2ee   :  { %v510_v31 = vpop.f32.mrf.mxu2 }
 0x2ef   :  { %v2873_v58 = vsel %vm2822_vm10, %v510_v31, -1e+30 }
 0x2f1   :  { %v397_v51 = vpop.f32.mrf.mxu1 }
 0x2f2   :  { %v2837_v20 = vsel %vm2822_vm10, %v397_v51, -1e+30 }
 0x2f3   :  { %v715_v36 = vpop.f32.mrf.mxu0 }
 0x2f4   :  { %v599_v39 = vpop.f32.mrf.mxu3  ;;  %v2696_v40 = vsel %vm2611_vm2, %v715_v36, -1e+30 }
 0x2f5   :  { %3825 = vst [vmem:[#allocation15_spill] sm:$0xff] %v2696_v40  ;;  %1057 = vmax.xlane.f32.xlu1 %v2696_v40  ;;  %v2701_v41 = vsel %vm2648_vm4, %v599_v39, -1e+30  ;;  %v2795_v39 = vsel %vm2731_vm7, %v498_v4, -1e+30 }
 0x2f6   :  { %3826 = vst [vmem:[#allocation16_spill] sm:$0xff] %v2701_v41  ;;  %1023 = vmax.xlane.f32.xlu2 %v2701_v41 }
 0x2fb   :  { %v718_v53 = vpop.f32.mrf.mxu0 }
 0x2fc   :  { %v602_v54 = vpop.f32.mrf.mxu3  ;;  %v2770_v23 = vsel %vm2623_vm3, %v718_v53, -1e+30  ;;  %v786_v53 = vcvt.s32.f32 %v770_v44 }
 0x2fd   :  { %969 = vmax.xlane.f32.xlu1 %v2717_v55  ;;  %v2726_v57 = vsel %vm2611_vm2, %v602_v54, -1e+30  ;;  %3839 = vst [vmem:[#allocation23_spill] sm:$0xff] %v2770_v23 }
 0x2fe   :  { %3831 = vst [vmem:[#allocation17_spill] sm:$0xff] %v2726_v57  ;;  %965 = vmax.xlane.f32.xlu2 %v2722_v56  ;;  %1025 = vmax.xlane.f32.xlu0 %v2726_v57 }
 0x303   :  { %v721_v63 = vpop.f32.mrf.mxu0 }
 0x304   :  { %v605_v0 = vpop.f32.mrf.mxu3  ;;  %v2738_v34 = vsel %vm2710_vm6, %v721_v63, -1e+30  ;;  %v2817_v63 = vsel %vm2810_vm9, %v504_v50, -1e+30  ;;  %v822_v50 = vmul.f32 0.015625, %v806_v46 }
 0x305   :  { %3834 = vst [vmem:[#allocation18_spill] sm:$0xff] %v2738_v34  ;;  %1061 = vmax.xlane.f32.xlu1 %v2738_v34  ;;  %v2755_v9 = vsel %vm2623_vm3, %v605_v0, -1e+30  ;;  %v805_v0 = vadd.f32 0.5, %v786_v53 }
 0x306   :  { %995 = vmax.xlane.f32.xlu2 %v2743_v1  ;;  %967 = vmax.xlane.f32.xlu0 %v2747_v2  ;;  %3836 = vst [vmem:[#allocation20_spill] sm:$0xff] %v2755_v9 }
 0x307   :  { %v821_v4 = vmul.f32 0.015625, %v805_v0  ;;  %v513_v0 = vpop.f32.mrf.mxu2 }
 0x30b   :  { %v724_v27 = vpop.f32.mrf.mxu0 }
 0x30c   :  { %v608_v11 = vpop.f32.mrf.mxu3  ;;  %v2787_v36 = vsel %vm2731_vm7, %v724_v27, -1e+30  ;;  %v400_v27 = vpop.f32.mrf.mxu1 }
 0x30d   :  { %v2807_v60 = vsel %vm2710_vm6, %v608_v11, -1e+30 }
 0x30e   :  { %997 = vmax.xlane.f32.xlu0 %v2759_v13  ;;  %1027 = vmax.xlane.f32.xlu2 %v2755_v9  ;;  %3844 = vst [vmem:[#allocation26_spill] sm:$0xff] %v2807_v60 }
 0x30f   :  { %v516_v16 = vpop.f32.mrf.mxu2 }
 0x313   :  { %v727_v47 = vpop.f32.mrf.mxu0 }
 0x314   :  { %v611_v21 = vpop.f32.mrf.mxu3  ;;  %v2803_v54 = vsel %vm2705_vm5, %v727_v47, -1e+30  ;;  %v772_v47 = vadd.s32 88, %v2599_v14  ;;  %v403_v51 = vpop.f32.mrf.mxu1 }
 0x315   :  { %v2774_v24 = vsel %vm2731_vm7, %v611_v21, -1e+30  ;;  %3843 = vst [vmem:[#allocation25_spill] sm:$0xff] %v2803_v54  ;;  %v837_v21 = vfloor.f32 %v821_v4 }
 0x316   :  { %3840 = vst [vmem:[#allocation24_spill] sm:$0xff] %v2774_v24  ;;  %1001 = vmax.xlane.f32.xlu0 %v2766_v22  ;;  %1059 = vmax.xlane.f32.xlu2 %v2770_v23  ;;  %v788_v52 = vcvt.s32.f32 %v772_v47 }
 0x317   :  { %1031 = vmax.xlane.f32.xlu1 %v2774_v24  ;;  %vm2843_vm11 = vcmp.eq.f32.partialorder %v837_v21, %v2608_v33  ;;  %v2949_v40 = vpop.xlane.xlu1 %959 }
 0x318   :  { %v2857_v43 = vsel %vm2843_vm11, %v400_v27, -1e+30  ;;  %v807_v61 = vadd.f32 0.5, %v788_v52  ;;  %v2894_v26 = vsel %vm2843_vm11, %v513_v0, -1e+30  ;;  %3856 = vst [vmem:[#allocation28_spill] sm:$0xff] %v2949_v40 }
 0x31b   :  { %v730_v15 = vpop.f32.mrf.mxu0 }
 0x31c   :  { %v614_v35 = vpop.f32.mrf.mxu3  ;;  %v2849_v30 = vsel %vm2810_vm9, %v730_v15, -1e+30  ;;  %v406_v31 = vpop.f32.mrf.mxu1 }
 0x31d   :  { %v2853_v32 = vsel %vm2705_vm5, %v614_v35, -1e+30  ;;  %v2869_v35 = vsel %vm2781_vm8, %v507_v6, -1e+30  ;;  %v823_v6 = vmul.f32 0.015625, %v807_v61 }
 0x31e   :  { %973 = vmax.xlane.f32.xlu0 %v2791_v37  ;;  %999 = vmax.xlane.f32.xlu2 %v2795_v39 }
 0x31f   :  { %1063 = vmax.xlane.f32.xlu1 %v2787_v36  ;;  %v839_v27 = vfloor.f32 %v823_v6  ;;  %v2925_v6 = vpop.xlane.xlu0 %961 }
 0x320   :  { %3855 = vst [vmem:[#allocation27_spill] sm:$0xff] %v2925_v6 }
 0x321   :  { %vm2899_vm13 = vcmp.eq.f32.partialorder %v839_v27, %v2608_v33 }
 0x322   :  { %v2913_v52 = vsel %vm2899_vm13, %v406_v31, -1e+30 }
 0x323   :  { %v733_v44 = vpop.f32.mrf.mxu0 }
 0x324   :  { %v617_v59 = vpop.f32.mrf.mxu3  ;;  %v2885_v15 = vsel %vm2781_vm8, %v733_v44, -1e+30 }
 0x325   :  { %v2828_v11 = vsel %vm2810_vm9, %v617_v59, -1e+30  ;;  %v838_v59 = vfloor.f32 %v822_v50 }
 0x326   :  { %1029 = vmax.xlane.f32.xlu2 %v2807_v60  ;;  %1065 = vmax.xlane.f32.xlu0 %v2803_v54 }
 0x327   :  { %1003 = vmax.xlane.f32.xlu1 %v2817_v63  ;;  %vm2879_vm12 = vcmp.eq.f32.partialorder %v838_v59, %v2608_v33  ;;  %v773_v59 = vadd.s32 96, %v2599_v14 }
 0x328   :  { %v2889_v21 = vsel %vm2879_vm12, %v403_v51, -1e+30  ;;  %v2929_v27 = vsel %vm2879_vm12, %v516_v16, -1e+30  ;;  %v776_v16 = vadd.s32 120, %v2599_v14 }
 0x329   :  { %v789_v61 = vcvt.s32.f32 %v773_v59  ;;  %v775_v59 = vadd.s32 112, %v2599_v14 }
 0x32a   :  { %v792_v14 = vcvt.s32.f32 %v776_v16 }
 0x32b   :  { %v736_v3 = vpop.f32.mrf.mxu0  ;;  %v808_v31 = vadd.f32 0.5, %v789_v61  ;;  %v791_v61 = vcvt.s32.f32 %v775_v59 }
 0x32c   :  { %v620_v18 = vpop.f32.mrf.mxu3  ;;  %v2921_v0 = vsel %vm2822_vm10, %v736_v3, -1e+30  ;;  %v409_v3 = vpop.f32.mrf.mxu1  ;;  %v811_v7 = vadd.f32 0.5, %v792_v14 }
 0x32d   :  { %v2865_v48 = vsel %vm2781_vm8, %v620_v18, -1e+30  ;;  %v824_v10 = vmul.f32 0.015625, %v808_v31  ;;  %v2959_v31 = vpop.xlane.xlu0 %963 }
 0x32e   :  { %971 = vmax.xlane.f32.xlu2 %v2832_v19  ;;  %1035 = vmax.xlane.f32.xlu0 %v2828_v11  ;;  %3857 = vst [vmem:[#allocation29_spill] sm:$0xff] %v2959_v31 }
 0x32f   :  { %975 = vmax.xlane.f32.xlu1 %v2837_v20  ;;  %v840_v28 = vfloor.f32 %v824_v10 }
 0x330   :  { %v2962_v41 = vpop.xlane.xlu2 %991 }
 0x331   :  { %3858 = vst [vmem:[#allocation30_spill] sm:$0xff] %v2962_v41  ;;  %vm2965_vm14 = vcmp.eq.f32.partialorder %v840_v28, %v2608_v33 }
 0x332   :  { %v2979_v14 = vsel %vm2965_vm14, %v409_v3, -1e+30 }
 0x333   :  { %v739_v42 = vpop.f32.mrf.mxu0 }
 0x334   :  { %v623_v29 = vpop.f32.mrf.mxu3  ;;  %v2909_v50 = vsel %vm2843_vm11, %v739_v42, -1e+30  ;;  %v412_v59 = vpop.f32.mrf.mxu1 }
 0x335   :  { %v2905_v46 = vsel %vm2822_vm10, %v623_v29, -1e+30  ;;  %v519_v29 = vpop.f32.mrf.mxu2  ;;  %v2983_v57 = vpop.xlane.xlu0 %993 }
 0x336   :  { %1033 = vmax.xlane.f32.xlu2 %v2853_v32  ;;  %977 = vmax.xlane.f32.xlu0 %v2857_v43  ;;  %v2935_v42 = vsel %vm2899_vm13, %v519_v29, -1e+30  ;;  %3862 = vst [vmem:[#allocation32_spill] sm:$0xff] %v2983_v57 }
 0x337   :  { %1067 = vmax.xlane.f32.xlu1 %v2849_v30 }
 0x33b   :  { %v742_v17 = vpop.f32.mrf.mxu0 }
 0x33c   :  { %v626_v53 = vpop.f32.mrf.mxu3  ;;  %v2947_v29 = vsel %vm2879_vm12, %v742_v17, -1e+30  ;;  %v810_v17 = vadd.f32 0.5, %v791_v61  ;;  %v827_v61 = vmul.f32 0.015625, %v811_v7  ;;  %v415_v7 = vpop.f32.mrf.mxu1 }
 0x33d   :  { %v2943_v8 = vsel %vm2843_vm11, %v626_v53, -1e+30  ;;  %v809_v53 = vadd.f32 0.5, %v790_v12 }
 0x33e   :  { %1005 = vmax.xlane.f32.xlu2 %v2869_v35  ;;  %1007 = vmax.xlane.f32.xlu0 %v2873_v58  ;;  %v826_v16 = vmul.f32 0.015625, %v810_v17  ;;  %v843_v17 = vfloor.f32 %v827_v61 }
 0x33f   :  { %1037 = vmax.xlane.f32.xlu1 %v2865_v48 }
 0x340   :  { %vm2998_vm2 = vcmp.eq.f32.partialorder %v843_v17, %v2608_v33  ;;  %v522_v17 = vpop.f32.mrf.mxu2 }
 0x343   :  { %v745_v38 = vpop.f32.mrf.mxu0 }
 0x344   :  { %v629_v18 = vpop.f32.mrf.mxu3  ;;  %v3035_v5 = vsel %vm2899_vm13, %v745_v38, -1e+30 }
 0x345   :  { %v2955_v23 = vsel %vm2879_vm12, %v629_v18, -1e+30  ;;  %v825_v18 = vmul.f32 0.015625, %v809_v53  ;;  %v842_v53 = vfloor.f32 %v826_v16 }
 0x346   :  { %979 = vmax.xlane.f32.xlu0 %v2889_v21  ;;  %1069 = vmax.xlane.f32.xlu2 %v2885_v15 }
 0x347   :  { %1009 = vmax.xlane.f32.xlu1 %v2894_v26  ;;  %v841_v28 = vfloor.f32 %v825_v18  ;;  %vm2993_vm1 = vcmp.eq.f32.partialorder %v842_v53, %v2608_v33 }
 0x348   :  { %v3015_v53 = vsel %vm2993_vm1, %v415_v7, -1e+30  ;;  %v525_v60 = vpop.f32.mrf.mxu2 }
 0x349   :  { %vm2988_vm15 = vcmp.eq.f32.partialorder %v841_v28, %v2608_v33 }
 0x34a   :  { %v3004_v61 = vsel %vm2988_vm15, %v412_v59, -1e+30 }
 0x34c   :  { %v632_v47 = vpop.f32.mrf.mxu3 }
 0x34d   :  { %v2975_v12 = vsel %vm2899_vm13, %v632_v47, -1e+30 }
 0x34e   :  { %981 = vmax.xlane.f32.xlu0 %v2913_v52  ;;  %1039 = vmax.xlane.f32.xlu2 %v2905_v46 }
 0x34f   :  { %1073 = vmax.xlane.f32.xlu1 %v2909_v50 }
 0x354   :  { %v2923_v51 = vpop.f32.mrf.mxu3 }
 0x356   :  { %1011 = vmax.xlane.f32.xlu2 %v2929_v27  ;;  %1071 = vmax.xlane.f32.xlu0 %v2921_v0 }
 0x357   :  { %1013 = vmax.xlane.f32.xlu1 %v2935_v42 }
 0x35c   :  { %v2951_v25 = vpop.f32.mrf.mxu3 }
 0x35e   :  { %1041 = vmax.xlane.f32.xlu0 %v2943_v8  ;;  %1075 = vmax.xlane.f32.xlu2 %v2947_v29 }
 0x35f   :  { %1043 = vmax.xlane.f32.xlu1 %v2955_v23 }
 0x360   :  { %v2969_v1 = vpop.xlane.xlu1 %1055 }
 0x361   :  { %3861 = vst [vmem:[#allocation31_spill] sm:$0xff] %v2969_v1 }
 0x364   :  { %v2971_v10 = vpop.f32.mrf.mxu3 }
 0x366   :  { %983 = vmax.xlane.f32.xlu0 %v2979_v14 }
 0x367   :  { %1045 = vmax.xlane.f32.xlu1 %v2975_v12 }
 0x369   :  { %v2985_v1 = vpop.xlane.xlu2 %1023 }
 0x36a   :  { %3863 = vst [vmem:[#allocation33_spill] sm:$0xff] %v2985_v1  ;;  %v3010_v1 = vpop.xlane.xlu1 %1057 }
 0x36b   :  { %3870 = vst [vmem:[#allocation34_spill] sm:$0xff] %v3010_v1 }
 0x36c   :  { %v644_v18 = vpop.f32.mrf.mxu3 }
 0x36d   :  { %v3008_v28 = vsel %vm2998_vm2, %v644_v18, -1e+30  ;;  %v3025_v18 = vsel %vm2965_vm14, %v522_v17, -1e+30 }
 0x36e   :  { %985 = vmax.xlane.f32.xlu0 %v3004_v61  ;;  %1053 = vmax.xlane.f32.xlu2 %v3008_v28 }
 0x36f   :  { %987 = vmax.xlane.f32.xlu1 %v3015_v53 }
 0x371   :  { %v3019_v33 = vpop.xlane.xlu2 %965  ;;  %v3021_v59 = vpop.xlane.xlu0 %1025 }
 0x372   :  { %3871 = vst [vmem:[#allocation35_spill] sm:$0xff] %v3021_v59  ;;  %v3028_v1 = vpop.xlane.xlu1 %969 }
 0x376   :  { %1015 = vmax.xlane.f32.xlu0 %v3025_v18 }
 0x379   :  { %v3030_v7 = vpop.xlane.xlu2 %995  ;;  %v968_v6 = vpop.xlane.xlu0 %967 }
 0x37a   :  { %3872 = vst [vmem:[#allocation36_spill] sm:$0xff] %v3030_v7  ;;  %v1091_v34 = vsub.f32 %v2747_v2, %v968_v6  ;;  %v3042_v13 = vpop.xlane.xlu1 %1061  ;;  %v3048_v2 = vsel %vm2988_vm15, %v525_v60, -1e+30  ;;  %v3061_v6 = vsel %vm2965_vm14, %v2923_v51, -1e+30  ;;  %v418_v7 = vpop.f32.mrf.mxu1 }
 0x37b   :  { %3874 = vst [vmem:[#allocation38_spill] sm:$0xff] %v3042_v13  ;;  %v748_v51 = vpop.f32.mrf.mxu0 }
 0x37c   :  { %v1159_v59 = vmul.f32 1.442695, %v1091_v34 }
 0x37e   :  { %1077 = vmax.xlane.f32.xlu0 %v3035_v5  ;;  %2130 = vpow2.f32 %v1159_v59 }
 0x381   :  { %v3038_v17 = vpop.xlane.xlu0 %997  ;;  %v3040_v41 = vpop.xlane.xlu2 %1027 }
 0x382   :  { %3873 = vst [vmem:[#allocation37_spill] sm:$0xff] %v3038_v17 }
 0x384   :  { %v3044_v49 = vpop.eup %2130 }
 0x385   :  { %3875 = vst [vmem:[#allocation39_spill] sm:$0xff] %v3044_v49  ;;  %1287 = vadd.xlane.f32.xlu2 %v3044_v49 }
 0x386   :  { %1017 = vmax.xlane.f32.xlu0 %v3048_v2 }
 0x389   :  { %v3052_v38 = vpop.xlane.xlu0 %1001  ;;  %v3054_v34 = vpop.xlane.xlu2 %1059 }
 0x38a   :  { %3876 = vst [vmem:[#allocation40_spill] sm:$0xff] %v3052_v38  ;;  %v3056_v44 = vpop.xlane.xlu1 %1031 }
 0x38b   :  { %3877 = vst [vmem:[#allocation41_spill] sm:$0xff] %v3054_v34  ;;  %v3071_v34 = vsel %vm2998_vm2, %v418_v7, -1e+30 }
 0x38c   :  { %3878 = vst [vmem:[#allocation42_spill] sm:$0xff] %v3056_v44 }
 0x38e   :  { %1047 = vmax.xlane.f32.xlu0 %v3061_v6 }
 0x391   :  { %v974_v59 = vpop.xlane.xlu0 %973  ;;  %v3064_v60 = vpop.xlane.xlu2 %999 }
 0x392   :  { %v1094_v49 = vsub.f32 %v2791_v37, %v974_v59  ;;  %v3067_v13 = vpop.xlane.xlu1 %1063  ;;  %v3082_v37 = vsel %vm2965_vm14, %v748_v51, -1e+30 }
 0x394   :  { %v1165_v17 = vmul.f32 1.442695, %v1094_v49 }
 0x396   :  { %2132 = vpow2.f32 %v1165_v17  ;;  %989 = vmax.xlane.f32.xlu0 %v3071_v34  ;;  %v528_v17 = vpop.f32.mrf.mxu2 }
 0x397   :  { %v3094_v4 = vsel %vm2993_vm1, %v528_v17, -1e+30 }
 0x399   :  { %v3074_v57 = vpop.xlane.xlu2 %1029  ;;  %v3076_v54 = vpop.xlane.xlu0 %1065 }
 0x39a   :  { %3879 = vst [vmem:[#allocation43_spill] sm:$0xff] %v3074_v57  ;;  %v3078_v62 = vpop.xlane.xlu1 %1003 }
 0x39b   :  { %3880 = vst [vmem:[#allocation44_spill] sm:$0xff] %v3076_v54 }
 0x39c   :  { %v3084_v59 = vpop.eup %2132 }
 0x39d   :  { %3881 = vst [vmem:[#allocation45_spill] sm:$0xff] %v3084_v59  ;;  %1293 = vadd.xlane.f32.xlu2 %v3084_v59 }
 0x39e   :  { %1079 = vmax.xlane.f32.xlu0 %v3082_v37 }
 0x3a1   :  { %v972_v49 = vpop.xlane.xlu2 %971  ;;  %v1036_v7 = vpop.xlane.xlu0 %1035 }
 0x3a2   :  { %v1093_v40 = vsub.f32 %v2832_v19, %v972_v49  ;;  %v3089_v57 = vpop.xlane.xlu1 %975  ;;  %v1125_v54 = vsub.f32 %v2828_v11, %v1036_v7  ;;  %v3104_v19 = vsel %vm2988_vm15, %v2951_v25, -1e+30 }
 0x3a4   :  { %v1163_v45 = vmul.f32 1.442695, %v1093_v40  ;;  %v1227_v31 = vmul.f32 1.442695, %v1125_v54 }
 0x3a6   :  { %2134 = vpow2.f32 %v1163_v45  ;;  %1019 = vmax.xlane.f32.xlu0 %v3094_v4  ;;  %v751_v45 = vpop.f32.mrf.mxu0 }
 0x3a7   :  { %2136 = vpow2.f32 %v1227_v31  ;;  %v3119_v25 = vsel %vm2988_vm15, %v751_v45, -1e+30 }
 0x3a9   :  { %v3097_v51 = vpop.xlane.xlu2 %1033  ;;  %v978_v59 = vpop.xlane.xlu0 %977 }
 0x3aa   :  { %v3099_v22 = vpop.xlane.xlu1 %1067  ;;  %v1096_v24 = vsub.f32 %v2857_v43, %v978_v59 }
 0x3ac   :  { %v3106_v40 = vpop.eup %2134 }
 0x3ad   :  { %3882 = vst [vmem:[#allocation46_spill] sm:$0xff] %v3106_v40  ;;  %1291 = vadd.xlane.f32.xlu1 %v3106_v40  ;;  %v3109_v54 = vpop.eup %2136 }
 0x3ae   :  { %3883 = vst [vmem:[#allocation47_spill] sm:$0xff] %v3109_v54  ;;  %1049 = vmax.xlane.f32.xlu0 %v3104_v19  ;;  %1355 = vadd.xlane.f32.xlu2 %v3109_v54  ;;  %v1169_v54 = vmul.f32 1.442695, %v1096_v24 }
 0x3b1   :  { %v1006_v11 = vpop.xlane.xlu2 %1005  ;;  %v1008_v31 = vpop.xlane.xlu0 %1007 }
 0x3b2   :  { %v1110_v49 = vsub.f32 %v2869_v35, %v1006_v11  ;;  %v1111_v7 = vsub.f32 %v2873_v58, %v1008_v31  ;;  %v3115_v17 = vpop.xlane.xlu1 %1037  ;;  %v531_v35 = vpop.f32.mrf.mxu2 }
 0x3b3   :  { %v3133_v43 = vsel %vm2998_vm2, %v531_v35, -1e+30 }
 0x3b4   :  { %v1197_v40 = vmul.f32 1.442695, %v1110_v49  ;;  %v1199_v38 = vmul.f32 1.442695, %v1111_v7  ;;  %v3148_v49 = vsel %vm2993_vm1, %v2971_v10, -1e+30 }
 0x3b6   :  { %2138 = vpow2.f32 %v1197_v40  ;;  %1081 = vmax.xlane.f32.xlu0 %v3119_v25 }
 0x3b7   :  { %2140 = vpow2.f32 %v1199_v38 }
 0x3b8   :  { %2142 = vpow2.f32 %v1169_v54 }
 0x3b9   :  { %v980_v44 = vpop.xlane.xlu0 %979  ;;  %v1070_v9 = vpop.xlane.xlu2 %1069 }
 0x3ba   :  { %v1097_v58 = vsub.f32 %v2889_v21, %v980_v44  ;;  %v3124_v11 = vpop.xlane.xlu1 %1009  ;;  %v1142_v24 = vsub.f32 %v2885_v15, %v1070_v9  ;;  %v754_v15 = vpop.f32.mrf.mxu0 }
 0x3bc   :  { %v3126_v31 = vpop.eup %2138  ;;  %v1171_v47 = vmul.f32 1.442695, %v1097_v58  ;;  %v1261_v38 = vmul.f32 1.442695, %v1142_v24  ;;  %v3156_v24 = vsel %vm2993_vm1, %v754_v15, -1e+30 }
 0x3bd   :  { %3884 = vst [vmem:[#allocation48_spill] sm:$0xff] %v3126_v31  ;;  %v3128_v45 = vpop.eup %2140  ;;  %1325 = vadd.xlane.f32.xlu1 %v3126_v31 }
 0x3be   :  { %2144 = vpow2.f32 %v1171_v47  ;;  %1327 = vadd.xlane.f32.xlu2 %v3128_v45  ;;  %1021 = vmax.xlane.f32.xlu0 %v3133_v43  ;;  %v3140_v59 = vpop.eup %2142 }
 0x3bf   :  { %2146 = vpow2.f32 %v1261_v38 }
 0x3c1   :  { %v982_v21 = vpop.xlane.xlu0 %981  ;;  %v1040_v40 = vpop.xlane.xlu2 %1039 }
 0x3c2   :  { %v3138_v44 = vpop.xlane.xlu1 %1073  ;;  %v1127_v9 = vsub.f32 %v2905_v46, %v1040_v40  ;;  %v1098_v38 = vsub.f32 %v2913_v52, %v982_v21  ;;  %v1092_v46 = vsub.f32 %v2717_v55, %v3028_v1 }
 0x3c4   :  { %v3142_v54 = vpop.eup %2144  ;;  %v1231_v35 = vmul.f32 1.442695, %v1127_v9  ;;  %v1173_v40 = vmul.f32 1.442695, %v1098_v38 }
 0x3c5   :  { %1297 = vadd.xlane.f32.xlu1 %v3140_v59  ;;  %v3158_v31 = vpop.eup %2146 }
 0x3c6   :  { %1299 = vadd.xlane.f32.xlu2 %v3142_v54  ;;  %1051 = vmax.xlane.f32.xlu0 %v3148_v49  ;;  %3885 = vst [vmem:[#allocation49_spill] sm:$0xff] %v3158_v31  ;;  %2148 = vpow2.f32 %v1231_v35 }
 0x3c9   :  { %v1072_v7 = vpop.xlane.xlu0 %1071  ;;  %v1012_v3 = vpop.xlane.xlu2 %1011 }
 0x3ca   :  { %v1143_v58 = vsub.f32 %v2921_v0, %v1072_v7  ;;  %v1014_v47 = vpop.xlane.xlu1 %1013  ;;  %v757_v0 = vpop.f32.mrf.mxu0  ;;  %v1113_v55 = vsub.f32 %v2929_v27, %v1012_v3  ;;  %v1095_v3 = vsub.f32 %v2837_v20, %v3089_v57 }
 0x3cb   :  { %v3170_v52 = vsel %vm2998_vm2, %v757_v0, -1e+30 }
 0x3cc   :  { %v1263_v10 = vmul.f32 1.442695, %v1143_v58  ;;  %v1161_v58 = vmul.f32 1.442695, %v1092_v46  ;;  %v3172_v21 = vpop.eup %2148  ;;  %v1203_v1 = vmul.f32 1.442695, %v1113_v55 }
 0x3cd   :  { %1389 = vadd.xlane.f32.xlu1 %v3158_v31  ;;  %3886 = vst [vmem:[#allocation50_spill] sm:$0xff] %v3172_v21 }
 0x3ce   :  { %1083 = vmax.xlane.f32.xlu0 %v3156_v24  ;;  %2150 = vpow2.f32 %v1263_v10 }
 0x3cf   :  { %2152 = vpow2.f32 %v1173_v40 }
 0x3d1   :  { %v1042_v9 = vpop.xlane.xlu0 %1041  ;;  %v1076_v55 = vpop.xlane.xlu2 %1075 }
 0x3d2   :  { %v1128_v15 = vsub.f32 %v2943_v8, %v1042_v9  ;;  %v3166_v7 = vpop.xlane.xlu1 %1043  ;;  %v1109_v8 = vsub.f32 %v2817_v63, %v3078_v62  ;;  %v1114_v62 = vsub.f32 %v2935_v42, %v1014_v47  ;;  %v1167_v63 = vmul.f32 1.442695, %v1095_v3 }
 0x3d3   :  { %v1145_v42 = vsub.f32 %v2947_v29, %v1076_v55 }
 0x3d4   :  { %v1233_v35 = vmul.f32 1.442695, %v1128_v15  ;;  %v3174_v31 = vpop.eup %2150  ;;  %v1195_v0 = vmul.f32 1.442695, %v1109_v8 }
 0x3d5   :  { %3887 = vst [vmem:[#allocation51_spill] sm:$0xff] %v3174_v31  ;;  %1359 = vadd.xlane.f32.xlu1 %v3172_v21  ;;  %1391 = vadd.xlane.f32.xlu2 %v3174_v31  ;;  %v3183_v46 = vpop.eup %2152 }
 0x3d6   :  { %2154 = vpow2.f32 %v1233_v35  ;;  %1085 = vmax.xlane.f32.xlu0 %v3170_v52  ;;  %v1205_v35 = vmul.f32 1.442695, %v1114_v62 }
 0x3d7   :  { %2156 = vpow2.f32 %v1161_v58 }
 0x3d8   :  { %2158 = vpow2.f32 %v1203_v1 }
 0x3d9   :  { %v984_v16 = vpop.xlane.xlu0 %983 }
 0x3da   :  { %v1099_v10 = vsub.f32 %v2979_v14, %v984_v16  ;;  %v1046_v38 = vpop.xlane.xlu1 %1045  ;;  %v1126_v16 = vsub.f32 %v2865_v48, %v3115_v17 }
 0x3db   :  { %v1130_v29 = vsub.f32 %v2975_v12, %v1046_v38 }
 0x3dc   :  { %v3185_v27 = vpop.eup %2154  ;;  %v1175_v40 = vmul.f32 1.442695, %v1099_v10  ;;  %v1229_v47 = vmul.f32 1.442695, %v1126_v16 }
 0x3dd   :  { %3888 = vst [vmem:[#allocation52_spill] sm:$0xff] %v3185_v27  ;;  %v3187_v9 = vpop.eup %2156  ;;  %1301 = vadd.xlane.f32.xlu1 %v3183_v46  ;;  %1361 = vadd.xlane.f32.xlu2 %v3185_v27  ;;  %v1237_v17 = vmul.f32 1.442695, %v1130_v29 }
 0x3de   :  { %2160 = vpow2.f32 %v1175_v40  ;;  %1289 = vadd.xlane.f32.xlu0 %v3187_v9  ;;  %v3196_v58 = vpop.eup %2158 }
 0x3df   :  { %2162 = vpow2.f32 %v1195_v0  ;;  %v1267_v0 = vmul.f32 1.442695, %v1145_v42  ;;  %v1129_v42 = vsub.f32 %v2955_v23, %v3166_v7 }
 0x3e0   :  { %2164 = vpow2.f32 %v1167_v63 }
 0x3e1   :  { %v986_v14 = vpop.xlane.xlu0 %985 }
 0x3e2   :  { %v1100_v15 = vsub.f32 %v3004_v61, %v986_v14  ;;  %v988_v8 = vpop.xlane.xlu1 %987 }
 0x3e3   :  { %v1101_v61 = vsub.f32 %v3015_v53, %v988_v8  ;;  %v1112_v53 = vsub.f32 %v2894_v26, %v3124_v11 }
 0x3e4   :  { %v3198_v57 = vpop.eup %2160  ;;  %v1177_v20 = vmul.f32 1.442695, %v1100_v15 }
 0x3e5   :  { %v3200_v1 = vpop.eup %2162  ;;  %1331 = vadd.xlane.f32.xlu1 %v3196_v58  ;;  %1303 = vadd.xlane.f32.xlu2 %v3198_v57  ;;  %v1179_v3 = vmul.f32 1.442695, %v1101_v61 }
 0x3e6   :  { %3889 = vst [vmem:[#allocation53_spill] sm:$0xff] %v3200_v1  ;;  %2166 = vpow2.f32 %v1177_v20  ;;  %1323 = vadd.xlane.f32.xlu0 %v3200_v1  ;;  %v3209_v40 = vpop.eup %2164 }
 0x3e7   :  { %2168 = vpow2.f32 %v1205_v35  ;;  %v1201_v35 = vmul.f32 1.442695, %v1112_v53 }
 0x3e8   :  { %2170 = vpow2.f32 %v1229_v47 }
 0x3e9   :  { %v1016_v10 = vpop.xlane.xlu0 %1015  ;;  %2172 = vpow2.f32 %v1267_v0 }
 0x3ea   :  { %2174 = vpow2.f32 %v1179_v3  ;;  %v1115_v47 = vsub.f32 %v3025_v18, %v1016_v10 }
 0x3eb   :  { %2176 = vpow2.f32 %v1237_v17 }
 0x3ec   :  { %v3211_v62 = vpop.eup %2166  ;;  %v1207_v29 = vmul.f32 1.442695, %v1115_v47 }
 0x3ed   :  { %v3213_v48 = vpop.eup %2168  ;;  %1305 = vadd.xlane.f32.xlu1 %v3211_v62 }
 0x3ee   :  { %1333 = vadd.xlane.f32.xlu2 %v3213_v48  ;;  %1295 = vadd.xlane.f32.xlu0 %v3209_v40  ;;  %v3222_v15 = vpop.eup %2170 }
 0x3ef   :  { %3890 = vst [vmem:[#allocation54_spill] sm:$0xff] %v3222_v15  ;;  %v3224_v55 = vpop.eup %2172 }
 0x3f0   :  { %3891 = vst [vmem:[#allocation55_spill] sm:$0xff] %v3224_v55  ;;  %v3226_v38 = vpop.eup %2174 }
 0x3f1   :  { %v1078_v63 = vpop.xlane.xlu0 %1077  ;;  %v3233_v11 = vpop.eup %2176 }
 0x3f2   :  { %v1146_v14 = vsub.f32 %v3035_v5, %v1078_v63  ;;  %v1144_v5 = vsub.f32 %v2909_v50, %v3138_v44  ;;  %v1235_v50 = vmul.f32 1.442695, %v1129_v42  ;;  %v1054_v42 = vpop.xlane.xlu2 %1053 }
 0x3f4   :  { %v1269_v12 = vmul.f32 1.442695, %v1146_v14  ;;  %v1265_v20 = vmul.f32 1.442695, %v1144_v5 }
 0x3f5   :  { %1395 = vadd.xlane.f32.xlu1 %v3224_v55 }
 0x3f6   :  { %2178 = vpow2.f32 %v1269_v12  ;;  %1307 = vadd.xlane.f32.xlu2 %v3226_v38  ;;  %1357 = vadd.xlane.f32.xlu0 %v3222_v15 }
 0x3f7   :  { %2180 = vpow2.f32 %v1201_v35 }
 0x3f8   :  { %2182 = vpow2.f32 %v1265_v20 }
 0x3f9   :  { %v1018_v26 = vpop.xlane.xlu0 %1017  ;;  %2184 = vpow2.f32 %v1235_v50 }
 0x3fa   :  { %v1116_v23 = vsub.f32 %v3048_v2, %v1018_v26 }
 0x3fc   :  { %v3235_v8 = vpop.eup %2178  ;;  %v1209_v63 = vmul.f32 1.442695, %v1116_v23 }
 0x3fd   :  { %3892 = vst [vmem:[#allocation56_spill] sm:$0xff] %v3235_v8  ;;  %v3237_v16 = vpop.eup %2180  ;;  %1365 = vadd.xlane.f32.xlu1 %v3233_v11 }
 0x3fe   :  { %1397 = vadd.xlane.f32.xlu2 %v3235_v8  ;;  %1329 = vadd.xlane.f32.xlu0 %v3237_v16  ;;  %v3244_v44 = vpop.eup %2182 }
 0x3ff   :  { %3893 = vst [vmem:[#allocation57_spill] sm:$0xff] %v3244_v44  ;;  %v3249_v17 = vpop.eup %2184 }
 0x401   :  { %v1048_v61 = vpop.xlane.xlu0 %1047 }
 0x402   :  { %v1131_v18 = vsub.f32 %v3061_v6, %v1048_v61 }
 0x404   :  { %v1239_v12 = vmul.f32 1.442695, %v1131_v18 }
 0x406   :  { %1393 = vadd.xlane.f32.xlu0 %v3244_v44 }
 0x409   :  { %v990_v0 = vpop.xlane.xlu0 %989 }
 0x40a   :  { %v1102_v3 = vsub.f32 %v3071_v34, %v990_v0 }
 0x40c   :  { %v1181_v53 = vmul.f32 1.442695, %v1102_v3 }
 0x40e   :  { %2186 = vpow2.f32 %v1181_v53  ;;  %1363 = vadd.xlane.f32.xlu0 %v3249_v17 }
 0x40f   :  { %2188 = vpow2.f32 %v1207_v29 }
 0x410   :  { %2190 = vpow2.f32 %v1209_v63  ;;  %v3284_v63 = vpop.xlane.xlu2 %1287 }
 0x411   :  { %v1080_v7 = vpop.xlane.xlu0 %1079 }
 0x412   :  { %v1147_v2 = vsub.f32 %v3082_v37, %v1080_v7 }
 0x414   :  { %v3253_v14 = vpop.eup %2186  ;;  %v1271_v47 = vmul.f32 1.442695, %v1147_v2 }
 0x415   :  { %v3255_v35 = vpop.eup %2188  ;;  %1309 = vadd.xlane.f32.xlu1 %v3253_v14 }
 0x416   :  { %1335 = vadd.xlane.f32.xlu0 %v3255_v35  ;;  %v3261_v20 = vpop.eup %2190 }
 0x419   :  { %v1020_v34 = vpop.xlane.xlu0 %1019 }
 0x41a   :  { %v1117_v10 = vsub.f32 %v3094_v4, %v1020_v34  ;;  %v1134_v4 = vsub.f32 %v3008_v28, %v1054_v42  ;;  %v1124_v28 = vsub.f32 %v2853_v32, %v3097_v51  ;;  %v1090_v32 = vsub.f32 %v2722_v56, %v3019_v33  ;;  %v3297_v51 = vpop.xlane.xlu2 %1293 }
 0x41b   :  { %v1107_v56 = vsub.f32 %v2795_v39, %v3064_v60  ;;  %v1141_v60 = vsub.f32 %v2849_v30, %v3099_v22  ;;  %v3900_v22 = vld [vmem:[#allocation20_spill] sm:$0xff] }
 0x41c   :  { %v1211_v5 = vmul.f32 1.442695, %v1117_v10  ;;  %v1245_v37 = vmul.f32 1.442695, %v1134_v4  ;;  %v1225_v34 = vmul.f32 1.442695, %v1124_v28  ;;  %v1139_v28 = vsub.f32 %v2787_v36, %v3067_v13 }
 0x41d   :  { %v1121_v30 = vsub.f32 %v3900_v22, %v3040_v41  ;;  %v3909_v22 = vld [vmem:[#allocation6_spill] sm:$0xff] }
 0x41e   :  { %2192 = vpow2.f32 %v1211_v5  ;;  %1337 = vadd.xlane.f32.xlu0 %v3261_v20 }
 0x41f   :  { %2194 = vpow2.f32 %v1239_v12 }
 0x420   :  { %v3273_v3 = vpop.xlane.xlu1 %1291 }
 0x421   :  { %v1050_v26 = vpop.xlane.xlu0 %1049 }
 0x422   :  { %v1132_v50 = vsub.f32 %v3104_v19, %v1050_v26  ;;  %v1157_v26 = vmul.f32 1.442695, %v1090_v32  ;;  %v3310_v33 = vpop.xlane.xlu2 %1355 }
 0x424   :  { %v3266_v0 = vpop.eup %2192  ;;  %v1241_v6 = vmul.f32 1.442695, %v1132_v50 }
 0x425   :  { %v3268_v61 = vpop.eup %2194  ;;  %1339 = vadd.xlane.f32.xlu1 %v3266_v0 }
 0x426   :  { %2196 = vpow2.f32 %v1241_v6  ;;  %1367 = vadd.xlane.f32.xlu0 %v3268_v61 }
 0x427   :  { %2198 = vpow2.f32 %v1271_v47 }
 0x428   :  { %2200 = vpow2.f32 %v1245_v37  ;;  %v1191_v37 = vmul.f32 1.442695, %v1107_v56 }
 0x429   :  { %v1082_v29 = vpop.xlane.xlu0 %1081 }
 0x42a   :  { %v1148_v19 = vsub.f32 %v3119_v25, %v1082_v29 }
 0x42c   :  { %v3276_v53 = vpop.eup %2196  ;;  %v1273_v23 = vmul.f32 1.442695, %v1148_v19 }
 0x42d   :  { %v3278_v7 = vpop.eup %2198  ;;  %1369 = vadd.xlane.f32.xlu1 %v3276_v53 }
 0x42e   :  { %3894 = vst [vmem:[#allocation58_spill] sm:$0xff] %v3278_v7  ;;  %2202 = vpow2.f32 %v1273_v23  ;;  %1399 = vadd.xlane.f32.xlu0 %v3278_v7  ;;  %v3289_v12 = vpop.eup %2200 }
 0x42f   :  { %2204 = vpow2.f32 %v1225_v34 }
 0x430   :  { %v3286_v18 = vpop.xlane.xlu1 %1325 }
 0x431   :  { %v1022_v25 = vpop.xlane.xlu0 %1021 }
 0x432   :  { %v1118_v10 = vsub.f32 %v3133_v43, %v1022_v25  ;;  %v3325_v25 = vpop.xlane.xlu2 %1327 }
 0x434   :  { %v3291_v5 = vpop.eup %2202  ;;  %v1213_v2 = vmul.f32 1.442695, %v1118_v10  ;;  %v1259_v10 = vmul.f32 1.442695, %v1141_v60 }
 0x435   :  { %3895 = vst [vmem:[#allocation59_spill] sm:$0xff] %v3291_v5  ;;  %1373 = vadd.xlane.f32.xlu1 %v3289_v12  ;;  %1401 = vadd.xlane.f32.xlu2 %v3291_v5  ;;  %v3302_v47 = vpop.eup %2204 }
 0x436   :  { %2206 = vpow2.f32 %v1213_v2  ;;  %3896 = vst [vmem:[#allocation60_spill] sm:$0xff] %v3302_v47 }
 0x437   :  { %2208 = vpow2.f32 %v1157_v26 }
 0x438   :  { %v3299_v50 = vpop.xlane.xlu1 %1297 }
 0x439   :  { %v1052_v42 = vpop.xlane.xlu0 %1051 }
 0x43a   :  { %v1133_v43 = vsub.f32 %v3148_v49, %v1052_v42  ;;  %v3901_v42 = vld [vmem:[#allocation42_spill] sm:$0xff]  ;;  %v3346_v60 = vpop.xlane.xlu2 %1299 }
 0x43c   :  { %v3304_v6 = vpop.eup %2206  ;;  %v1243_v4 = vmul.f32 1.442695, %v1133_v43  ;;  %v3902_v43 = vld [vmem:[#allocation24_spill] sm:$0xff] }
 0x43d   :  { %1353 = vadd.xlane.f32.xlu1 %v3302_v47  ;;  %1341 = vadd.xlane.f32.xlu0 %v3304_v6  ;;  %v3313_v19 = vpop.eup %2208 }
 0x43e   :  { %2210 = vpow2.f32 %v1243_v4  ;;  %v1123_v4 = vsub.f32 %v3902_v43, %v3901_v42 }
 0x43f   :  { %2212 = vpow2.f32 %v1191_v37  ;;  %v3904_v37 = vld [vmem:[#allocation22_spill] sm:$0xff] }
 0x440   :  { %v3319_v34 = vpop.xlane.xlu1 %1389  ;;  %v1223_v41 = vmul.f32 1.442695, %v1123_v4  ;;  %v3912_v4 = vld [vmem:[#allocation44_spill] sm:$0xff] }
 0x441   :  { %v1084_v29 = vpop.xlane.xlu0 %1083  ;;  %3897 = vst [vmem:[#allocation61_spill] sm:$0xff] %v3319_v34 }
 0x442   :  { %v1149_v49 = vsub.f32 %v3156_v24, %v1084_v29  ;;  %v1255_v24 = vmul.f32 1.442695, %v1139_v28 }
 0x444   :  { %v3315_v23 = vpop.eup %2210  ;;  %v1275_v39 = vmul.f32 1.442695, %v1149_v49  ;;  %v1219_v49 = vmul.f32 1.442695, %v1121_v30  ;;  %v3911_v30 = vld [vmem:[#allocation8_spill] sm:$0xff] }
 0x445   :  { %1285 = vadd.xlane.f32.xlu1 %v3313_v19  ;;  %1371 = vadd.xlane.f32.xlu0 %v3315_v23  ;;  %v3328_v13 = vpop.eup %2212 }
 0x446   :  { %2214 = vpow2.f32 %v1275_v39  ;;  %3898 = vst [vmem:[#allocation62_spill] sm:$0xff] %v3328_v13 }
 0x447   :  { %2216 = vpow2.f32 %v1255_v24 }
 0x448   :  { %2218 = vpow2.f32 %v1259_v10  ;;  %v3338_v56 = vpop.xlane.xlu1 %1359 }
 0x449   :  { %v1086_v2 = vpop.xlane.xlu0 %1085 }
 0x44a   :  { %v1150_v32 = vsub.f32 %v3170_v52, %v1086_v2  ;;  %v3903_v52 = vld [vmem:[#allocation40_spill] sm:$0xff] }
 0x44b   :  { %v1108_v29 = vsub.f32 %v3904_v37, %v3903_v52  ;;  %v3913_v52 = vld [vmem:[#allocation25_spill] sm:$0xff] }
 0x44c   :  { %v3330_v36 = vpop.eup %2214  ;;  %v1277_v26 = vmul.f32 1.442695, %v1150_v32  ;;  %v3908_v32 = vld [vmem:[#allocation29_spill] sm:$0xff]  ;;  %v1140_v37 = vsub.f32 %v3913_v52, %v3912_v4  ;;  %v3922_v52 = vld [vmem:[#allocation43_spill] sm:$0xff] }
 0x44d   :  { %3899 = vst [vmem:[#allocation63_spill] sm:$0xff] %v3330_v36  ;;  %1319 = vadd.xlane.f32.xlu1 %v3328_v13  ;;  %1403 = vadd.xlane.f32.xlu0 %v3330_v36  ;;  %v3344_v39 = vpop.eup %2216  ;;  %v1193_v10 = vmul.f32 1.442695, %v1108_v29  ;;  %v1089_v42 = vsub.f32 %v3909_v22, %v3908_v32  ;;  %v3365_v32 = vpop.xlane.xlu2 %1391 }
 0x44e   :  { %2220 = vpow2.f32 %v1277_v26  ;;  %3905 = vst [vmem:[#allocation20_spill] sm:$0xff] %v3344_v39  ;;  %v3348_v24 = vpop.eup %2218  ;;  %v3910_v26 = vld [vmem:[#allocation28_spill] sm:$0xff] }
 0x44f   :  { %3906 = vst [vmem:[#allocation42_spill] sm:$0xff] %v3348_v24  ;;  %2222 = vpow2.f32 %v1219_v49  ;;  %v1087_v43 = vsub.f32 %v3911_v30, %v3910_v26  ;;  %v1155_v31 = vmul.f32 1.442695, %v1089_v42  ;;  %v3919_v26 = vld [vmem:[#allocation7_spill] sm:$0xff]  ;;  %v3920_v42 = vld [vmem:[#allocation37_spill] sm:$0xff] }
 0x450   :  { %2224 = vpow2.f32 %v1223_v41  ;;  %v3361_v29 = vpop.xlane.xlu1 %1301  ;;  %3914 = vst [vmem:[#allocation40_spill] sm:$0xff] %v3365_v32  ;;  %v3928_v32 = vld [vmem:[#allocation9_spill] sm:$0xff] }
 0x451   :  { %v3342_v28 = vpop.xlane.xlu0 %1289  ;;  %2226 = vpow2.f32 %v1193_v10  ;;  %v1151_v49 = vmul.f32 1.442695, %v1087_v43  ;;  %v3918_v10 = vld [vmem:[#allocation32_spill] sm:$0xff]  ;;  %v3921_v43 = vld [vmem:[#allocation21_spill] sm:$0xff] }
 0x452   :  { %2228 = vpow2.f32 %v1155_v31  ;;  %v1104_v30 = vsub.f32 %v3919_v26, %v3918_v10  ;;  %v1106_v4 = vsub.f32 %v3921_v43, %v3920_v42  ;;  %v3927_v43 = vld [vmem:[#allocation30_spill] sm:$0xff] }
 0x453   :  { %2230 = vpow2.f32 %v1151_v49 }
 0x454   :  { %v3350_v2 = vpop.eup %2220  ;;  %v1185_v8 = vmul.f32 1.442695, %v1104_v30  ;;  %v1189_v31 = vmul.f32 1.442695, %v1106_v4  ;;  %v3930_v30 = vld [vmem:[#allocation18_spill] sm:$0xff] }
 0x455   :  { %3907 = vst [vmem:[#allocation24_spill] sm:$0xff] %v3350_v2  ;;  %1383 = vadd.xlane.f32.xlu1 %v3344_v39  ;;  %1387 = vadd.xlane.f32.xlu0 %v3348_v24  ;;  %v3367_v22 = vpop.eup %2222  ;;  %v1257_v39 = vmul.f32 1.442695, %v1140_v37  ;;  %v3923_v37 = vld [vmem:[#allocation26_spill] sm:$0xff]  ;;  %v3390_v49 = vpop.xlane.xlu2 %1361 }
 0x456   :  { %1405 = vadd.xlane.f32.xlu2 %v3350_v2  ;;  %3915 = vst [vmem:[#allocation22_spill] sm:$0xff] %v3367_v22  ;;  %v3369_v24 = vpop.eup %2224  ;;  %v1122_v55 = vsub.f32 %v3923_v37, %v3922_v52  ;;  %v1103_v52 = vsub.f32 %v3928_v32, %v3927_v43  ;;  %v3932_v37 = vld [vmem:[#allocation5_spill] sm:$0xff] }
 0x457   :  { %3916 = vst [vmem:[#allocation29_spill] sm:$0xff] %v3369_v24  ;;  %v3371_v41 = vpop.eup %2226  ;;  %2232 = vpow2.f32 %v1257_v39  ;;  %v3929_v39 = vld [vmem:[#allocation38_spill] sm:$0xff] }
 0x458   :  { %3917 = vst [vmem:[#allocation6_spill] sm:$0xff] %v3371_v41  ;;  %v3384_v34 = vpop.xlane.xlu1 %1331  ;;  %v3386_v10 = vpop.eup %2228  ;;  %v1221_v26 = vmul.f32 1.442695, %v1122_v55  ;;  %2234 = vpow2.f32 %v1185_v8  ;;  %v1138_v4 = vsub.f32 %v3930_v30, %v3929_v39  ;;  %v3931_v55 = vld [vmem:[#allocation27_spill] sm:$0xff]  ;;  %v1183_v2 = vmul.f32 1.442695, %v1103_v52 }
 0x459   :  { %v3363_v44 = vpop.xlane.xlu0 %1323  ;;  %3924 = vst [vmem:[#allocation28_spill] sm:$0xff] %v3386_v10  ;;  %v3388_v5 = vpop.eup %2230  ;;  %2236 = vpow2.f32 %v1189_v31  ;;  %v1088_v36 = vsub.f32 %v3932_v37, %v3931_v55  ;;  %v3936_v31 = vld [vmem:[#allocation35_spill] sm:$0xff] }
 0x45a   :  { %3925 = vst [vmem:[#allocation8_spill] sm:$0xff] %v3388_v5  ;;  %2238 = vpow2.f32 %v1221_v26  ;;  %v1253_v8 = vmul.f32 1.442695, %v1138_v4  ;;  %v3937_v26 = vld [vmem:[#allocation17_spill] sm:$0xff]  ;;  %v3939_v30 = vld [vmem:[#allocation19_spill] sm:$0xff] }
 0x45b   :  { %v1153_v32 = vmul.f32 1.442695, %v1088_v36  ;;  %2240 = vpow2.f32 %v1183_v2  ;;  %v1120_v52 = vsub.f32 %v3937_v26, %v3936_v31  ;;  %v3938_v36 = vld [vmem:[#allocation36_spill] sm:$0xff] }
 0x45c   :  { %2242 = vpow2.f32 %v1253_v8  ;;  %v1105_v4 = vsub.f32 %v3939_v30, %v3938_v36  ;;  %v3943_v8 = vld [vmem:[#allocation33_spill] sm:$0xff]  ;;  %v3944_v31 = vld [vmem:[#allocation16_spill] sm:$0xff]  ;;  %v3947_v36 = vld [vmem:[#allocation23_spill] sm:$0xff] }
 0x45d   :  { %1347 = vadd.xlane.f32.xlu1 %v3367_v22  ;;  %1351 = vadd.xlane.f32.xlu0 %v3369_v24  ;;  %v3392_v42 = vpop.eup %2232  ;;  %v3417_v39 = vpop.xlane.xlu2 %1303  ;;  %2244 = vpow2.f32 %v1153_v32  ;;  %v1217_v37 = vmul.f32 1.442695, %v1120_v52  ;;  %v1119_v32 = vsub.f32 %v3944_v31, %v3943_v8  ;;  %v3946_v52 = vld [vmem:[#allocation41_spill] sm:$0xff]  ;;  %v3952_v8 = vld [vmem:[#allocation14_spill] sm:$0xff] }
 0x45e   :  { %1321 = vadd.xlane.f32.xlu2 %v3371_v41  ;;  %3926 = vst [vmem:[#allocation44_spill] sm:$0xff] %v3392_v42  ;;  %v3405_v24 = vpop.eup %2234  ;;  %v1137_v30 = vsub.f32 %v3947_v36, %v3946_v52  ;;  %v3954_v52 = vld [vmem:[#allocation15_spill] sm:$0xff] }
 0x45f   :  { %3933 = vst [vmem:[#allocation25_spill] sm:$0xff] %v3405_v24  ;;  %v3407_v43 = vpop.eup %2236  ;;  %2246 = vpow2.f32 %v1217_v37  ;;  %v1215_v47 = vmul.f32 1.442695, %v1119_v32  ;;  %v3951_v37 = vld [vmem:[#allocation31_spill] sm:$0xff] }
 0x460   :  { %3934 = vst [vmem:[#allocation32_spill] sm:$0xff] %v3407_v43  ;;  %v3411_v13 = vpop.eup %2238  ;;  %v1135_v31 = vsub.f32 %v3952_v8, %v3951_v37 }
 0x461   :  { %v3382_v7 = vpop.xlane.xlu0 %1295  ;;  %3935 = vst [vmem:[#allocation7_spill] sm:$0xff] %v3411_v13  ;;  %v3424_v2 = vpop.eup %2240 }
 0x462   :  { %3940 = vst [vmem:[#allocation37_spill] sm:$0xff] %v3424_v2 }
 0x465   :  { %1279 = vadd.xlane.f32.xlu1 %v3388_v5  ;;  %1283 = vadd.xlane.f32.xlu0 %v3386_v10  ;;  %v3409_v5 = vpop.xlane.xlu1 %1305 }
 0x466   :  { %1385 = vadd.xlane.f32.xlu2 %v3392_v42  ;;  %v1187_v42 = vmul.f32 1.442695, %v1105_v4  ;;  %v3439_v4 = vpop.xlane.xlu2 %1333 }
 0x468   :  { %2248 = vpow2.f32 %v1187_v42  ;;  %v3953_v42 = vld [vmem:[#allocation34_spill] sm:$0xff] }
 0x469   :  { %v3403_v22 = vpop.xlane.xlu0 %1357  ;;  %2250 = vpow2.f32 %v1215_v47  ;;  %v1136_v36 = vsub.f32 %v3954_v52, %v3953_v42 }
 0x46d   :  { %1313 = vadd.xlane.f32.xlu1 %v3405_v24  ;;  %1317 = vadd.xlane.f32.xlu0 %v3407_v43  ;;  %v3426_v24 = vpop.eup %2242  ;;  %v3434_v26 = vpop.xlane.xlu1 %1395 }
 0x46e   :  { %1349 = vadd.xlane.f32.xlu2 %v3411_v13  ;;  %3941 = vst [vmem:[#allocation21_spill] sm:$0xff] %v3426_v24  ;;  %v3428_v43 = vpop.eup %2244 }
 0x46f   :  { %3942 = vst [vmem:[#allocation43_spill] sm:$0xff] %v3428_v43  ;;  %v3443_v10 = vpop.eup %2246 }
 0x470   :  { %3945 = vst [vmem:[#allocation26_spill] sm:$0xff] %v3434_v26 }
 0x471   :  { %v3422_v55 = vpop.xlane.xlu0 %1329  ;;  %3949 = vst [vmem:[#allocation9_spill] sm:$0xff] %v3443_v10 }
 0x475   :  { %1311 = vadd.xlane.f32.xlu1 %v3424_v2  ;;  %1381 = vadd.xlane.f32.xlu0 %v3426_v24  ;;  %v1251_v2 = vmul.f32 1.442695, %v1137_v30  ;;  %v3445_v24 = vpop.eup %2248  ;;  %v3453_v26 = vpop.xlane.xlu1 %1365  ;;  %v1247_v30 = vmul.f32 1.442695, %v1135_v31 }
 0x476   :  { %1281 = vadd.xlane.f32.xlu2 %v3428_v43  ;;  %3950 = vst [vmem:[#allocation38_spill] sm:$0xff] %v3445_v24  ;;  %v1249_v43 = vmul.f32 1.442695, %v1136_v36  ;;  %v3457_v41 = vpop.eup %2250 }
 0x477   :  { %2252 = vpow2.f32 %v1251_v2  ;;  %3955 = vst [vmem:[#allocation18_spill] sm:$0xff] %v3457_v41 }
 0x479   :  { %v3441_v13 = vpop.xlane.xlu0 %1393 }
 0x47a   :  { %3948 = vst [vmem:[#allocation30_spill] sm:$0xff] %v3441_v13  ;;  %v1308_v13 = vpop.xlane.xlu2 %1307 }
 0x47b   :  { %2254 = vrcp.f32 %v1308_v13 }
 0x47c   :  { %2256 = vpow2.f32 %v1247_v30 }
 0x47d   :  { %1345 = vadd.xlane.f32.xlu0 %v3443_v10  ;;  %v3459_v10 = vpop.eup %2252  ;;  %2258 = vpow2.f32 %v1249_v43 }
 0x47e   :  { %1315 = vadd.xlane.f32.xlu2 %v3445_v24  ;;  %3956 = vst [vmem:[#allocation27_spill] sm:$0xff] %v3459_v10  ;;  %2260 = vrcp.f32 %v3409_v5 }
 0x481   :  { %v3455_v32 = vpop.xlane.xlu0 %1363  ;;  %v2255_v37 = vpop.eup %2254 }
 0x482   :  { %v3466_v8 = vpop.eup %2256  ;;  %v1485_v52 = vmul.f32 %v2255_v37, %v1308_v13 }
 0x483   :  { %3957 = vst [vmem:[#allocation5_spill] sm:$0xff] %v3466_v8  ;;  %v3468_v31 = vpop.eup %2258 }
 0x484   :  { %3958 = vst [vmem:[#allocation35_spill] sm:$0xff] %v3468_v31  ;;  %v2261_v42 = vpop.eup %2260 }
 0x485   :  { %1343 = vadd.xlane.f32.xlu0 %v3457_v41  ;;  %v1484_v30 = vmul.f32 %v2261_v42, %v3409_v5 }
 0x486   :  { %1379 = vadd.xlane.f32.xlu2 %v3459_v10  ;;  %v1549_v10 = vsub.f32 2.0, %v1485_v52 }
 0x487   :  { %v1548_v21 = vsub.f32 2.0, %v1484_v30 }
 0x488   :  { %v1310_v47 = vpop.xlane.xlu1 %1309 }
 0x489   :  { %2262 = vrcp.f32 %v1310_v47  ;;  %v3464_v2 = vpop.xlane.xlu0 %1335 }
 0x48a   :  { %2264 = vrcp.f32 %v3417_v39 }
 0x48b   :  { %2266 = vrcp.f32 %v3361_v29 }
 0x48c   :  { %2268 = vrcp.f32 %v3346_v60 }
 0x48d   :  { %1375 = vadd.xlane.f32.xlu0 %v3466_v8  ;;  %2270 = vrcp.f32 %v3299_v50 }
 0x48e   :  { %1377 = vadd.xlane.f32.xlu2 %v3468_v31  ;;  %v1613_v31 = vmul.f32 %v2255_v37, %v1549_v10  ;;  %2272 = vrcp.f32 %v3382_v7 }
 0x48f   :  { %v2263_v43 = vpop.eup %2262  ;;  %2274 = vrcp.f32 %v3297_v51 }
 0x490   :  { %v1486_v36 = vmul.f32 %v2263_v43, %v1310_v47  ;;  %v2265_v24 = vpop.eup %2264  ;;  %2276 = vrcp.f32 %v3273_v3 }
 0x491   :  { %v3475_v15 = vpop.xlane.xlu0 %1337  ;;  %v1483_v8 = vmul.f32 %v2265_v24, %v3417_v39  ;;  %v2267_v27 = vpop.eup %2266  ;;  %2278 = vrcp.f32 %v3342_v28 }
 0x492   :  { %v1550_v41 = vsub.f32 2.0, %v1486_v36  ;;  %v1482_v5 = vmul.f32 %v2267_v27, %v3361_v29  ;;  %v1677_v36 = vmul.f32 %v3226_v38, %v1613_v31 }
 0x493   :  { %v1547_v52 = vsub.f32 2.0, %v1483_v8 }
 0x494   :  { %v1614_v1 = vmul.f32 %v2263_v43, %v1550_v41  ;;  %v1612_v41 = vmul.f32 %v2261_v42, %v1548_v21  ;;  %v2269_v43 = vpop.eup %2268 }
 0x495   :  { %v1481_v39 = vmul.f32 %v2269_v43, %v3346_v60  ;;  %v1611_v37 = vmul.f32 %v2265_v24, %v1547_v52  ;;  %v2271_v30 = vpop.eup %2270 }
 0x496   :  { %v1678_v13 = vmul.f32 %v3253_v14, %v1614_v1  ;;  %v1546_v1 = vsub.f32 2.0, %v1482_v5  ;;  %v1676_v10 = vmul.f32 %v3211_v62, %v1612_v41  ;;  %v1480_v21 = vmul.f32 %v2271_v30, %v3299_v50  ;;  %v2273_v42 = vpop.eup %2272 }
 0x497   :  { %v1545_v38 = vsub.f32 2.0, %v1481_v39  ;;  %v1675_v8 = vmul.f32 %v3198_v57, %v1611_v37  ;;  %v2275_v60 = vpop.eup %2274  ;;  %v1479_v62 = vmul.f32 %v2273_v42, %v3382_v7 }
 0x498   :  { %1727 = vmatpush.xpose.msrb.mxu1 %v1678_v13  ;;  %v3480_v47 = vpop.xlane.xlu1 %1339  ;;  %v1610_v31 = vmul.f32 %v2267_v27, %v1546_v1  ;;  %v1544_v13 = vsub.f32 2.0, %v1480_v21  ;;  %v1478_v57 = vmul.f32 %v2275_v60, %v3297_v51  ;;  %v2277_v27 = vpop.eup %2276 }
 0x499   :  { %v3487_v14 = vpop.xlane.xlu0 %1367  ;;  %v1609_v5 = vmul.f32 %v2269_v43, %v1545_v38  ;;  %v2279_v43 = vpop.eup %2278 }
 0x49a   :  { %v1674_v24 = vmul.f32 %v3183_v46, %v1610_v31  ;;  %v1608_v39 = vmul.f32 %v2271_v30, %v1544_v13  ;;  %v1542_v7 = vsub.f32 2.0, %v1478_v57  ;;  %v1477_v46 = vmul.f32 %v2277_v27, %v3273_v3 }
 0x49b   :  { %v1673_v41 = vmul.f32 %v3142_v54, %v1609_v5  ;;  %v1476_v31 = vmul.f32 %v2279_v43, %v3342_v28 }
 0x49c   :  { %1728 = vmatpush.xpose.msrb.mxu1 %v1677_v36  ;;  %v1543_v36 = vsub.f32 2.0, %v1479_v62  ;;  %v1672_v1 = vmul.f32 %v3140_v59, %v1608_v39  ;;  %v1541_v54 = vsub.f32 2.0, %v1477_v46  ;;  %v1606_v30 = vmul.f32 %v2275_v60, %v1542_v7  ;;  %v3520_v7 = vpop.xlane.xlu2 %1397 }
 0x49e   :  { %v1605_v57 = vmul.f32 %v2277_v27, %v1541_v54  ;;  %v3960_v27 = vld [vmem:[#allocation46_spill] sm:$0xff] }
 0x4a0   :  { %1729 = vmatpush.xpose.msrb.mxu1 %v1676_v10  ;;  %v3491_v29 = vpop.xlane.xlu1 %1369  ;;  %v1607_v10 = vmul.f32 %v2273_v42, %v1543_v36 }
 0x4a1   :  { %v3499_v52 = vpop.xlane.xlu0 %1399 }
 0x4a2   :  { %v1671_v13 = vmul.f32 %v3209_v40, %v1607_v10 }
 0x4a4   :  { %1730 = vmatpush.xpose.msrb.mxu1 %v1675_v8 }
 0x4a8   :  { %1731 = vmatpush.xpose.msrb.mxu1 %v1674_v24  ;;  %v1374_v50 = vpop.xlane.xlu1 %1373  ;;  %v3959_v24 = vld [vmem:[#allocation45_spill] sm:$0xff] }
 0x4a9   :  { %2280 = vrcp.f32 %v1374_v50  ;;  %v1670_v5 = vmul.f32 %v3959_v24, %v1606_v30 }
 0x4aa   :  { %2282 = vrcp.f32 %v3284_v63 }
 0x4ab   :  { %2284 = vrcp.f32 %v3480_v47 }
 0x4ac   :  { %1732 = vmatpush.xpose.msrb.mxu1 %v1673_v41  ;;  %2286 = vrcp.f32 %v3475_v15 }
 0x4af   :  { %v2281_v37 = vpop.eup %2280 }
 0x4b0   :  { %v1518_v51 = vmul.f32 %v2281_v37, %v1374_v50  ;;  %1733 = vmatpush.xpose.msrb.mxu1 %v1672_v1  ;;  %v3507_v21 = vpop.xlane.xlu1 %1353  ;;  %v1342_v38 = vpop.xlane.xlu0 %1341  ;;  %v1540_v50 = vsub.f32 2.0, %v1476_v31  ;;  %v1669_v1 = vmul.f32 %v3960_v27, %v1605_v57 }
 0x4b1   :  { %v2283_v8 = vpop.eup %2282  ;;  %2288 = vrcp.f32 %v1342_v38 }
 0x4b2   :  { %v1582_v3 = vsub.f32 2.0, %v1518_v51  ;;  %v2285_v62 = vpop.eup %2284  ;;  %v1475_v42 = vmul.f32 %v2283_v8, %v3284_v63  ;;  %2290 = vrcp.f32 %v3464_v2  ;;  %v1604_v10 = vmul.f32 %v2279_v43, %v1540_v50 }
 0x4b3   :  { %2292 = vrcp.f32 %v3491_v29  ;;  %v2287_v28 = vpop.eup %2286  ;;  %v1501_v40 = vmul.f32 %v2285_v62, %v3480_v47 }
 0x4b4   :  { %v1646_v59 = vmul.f32 %v2281_v37, %v1582_v3  ;;  %1734 = vmatpush.xpose.msrb.mxu1 %v1671_v13  ;;  %2294 = vrcp.f32 %v3439_v4  ;;  %v1539_v39 = vsub.f32 2.0, %v1475_v42 }
 0x4b5   :  { %2296 = vrcp.f32 %v3487_v14  ;;  %v1565_v47 = vsub.f32 2.0, %v1501_v40 }
 0x4b6   :  { %v1710_v60 = vmul.f32 %v3289_v12, %v1646_v59  ;;  %v1500_v12 = vmul.f32 %v2287_v28, %v3475_v15  ;;  %v1603_v3 = vmul.f32 %v2283_v8, %v1539_v39  ;;  %v1668_v59 = vmul.f32 %v3187_v9, %v1604_v10 }
 0x4b7   :  { %v2289_v36 = vpop.eup %2288 }
 0x4b8   :  { %1767 = vmatpush.xpose.msra.mxu3 %v1710_v60  ;;  %v1286_v63 = vpop.xlane.xlu1 %1285  ;;  %1735 = vmatpush.xpose.msrb.mxu1 %v1670_v5  ;;  %v1372_v41 = vpop.xlane.xlu0 %1371  ;;  %v1502_v46 = vmul.f32 %v2289_v36, %v1342_v38  ;;  %v1564_v15 = vsub.f32 2.0, %v1500_v12  ;;  %v1629_v5 = vmul.f32 %v2285_v62, %v1565_v47 }
 0x4b9   :  { %2298 = vrcp.f32 %v1286_v63  ;;  %v2291_v37 = vpop.eup %2290 }
 0x4ba   :  { %2300 = vrcp.f32 %v1372_v41  ;;  %v1566_v51 = vsub.f32 2.0, %v1502_v46  ;;  %v2293_v54 = vpop.eup %2292  ;;  %v1499_v13 = vmul.f32 %v2291_v37, %v3464_v2  ;;  %v3536_v2 = vpop.xlane.xlu2 %1401 }
 0x4bb   :  { %2302 = vrcp.f32 %v3384_v34  ;;  %v2295_v30 = vpop.eup %2294  ;;  %v1516_v43 = vmul.f32 %v2293_v54, %v3491_v29 }
 0x4bc   :  { %1736 = vmatpush.xpose.msrb.mxu1 %v1669_v1  ;;  %2304 = vrcp.f32 %v3453_v26  ;;  %v1630_v31 = vmul.f32 %v2289_v36, %v1566_v51  ;;  %v2297_v38 = vpop.eup %2296  ;;  %v1498_v8 = vmul.f32 %v2295_v30, %v3439_v4  ;;  %v3961_v36 = vld [vmem:[#allocation39_spill] sm:$0xff]  ;;  %v1693_v4 = vmul.f32 %v3266_v0, %v1629_v5 }
 0x4bd   :  { %2306 = vrcp.f32 %v3422_v55  ;;  %v1667_v29 = vmul.f32 %v3961_v36, %v1603_v3  ;;  %v1515_v12 = vmul.f32 %v2297_v38, %v3487_v14  ;;  %v1580_v27 = vsub.f32 2.0, %v1516_v43 }
 0x4be   :  { %v1694_v24 = vmul.f32 %v3304_v6, %v1630_v31  ;;  %2308 = vrcp.f32 %v3455_v32  ;;  %v1563_v6 = vsub.f32 2.0, %v1499_v13  ;;  %v1562_v51 = vsub.f32 2.0, %v1498_v8 }
 0x4bf   :  { %v2299_v42 = vpop.eup %2298  ;;  %2310 = vrcp.f32 %v3325_v25  ;;  %v1579_v13 = vsub.f32 2.0, %v1515_v12 }
 0x4c0   :  { %v2301_v50 = vpop.eup %2300  ;;  %v1474_v60 = vmul.f32 %v2299_v42, %v1286_v63  ;;  %v3530_v57 = vpop.xlane.xlu1 %1319  ;;  %1737 = vmatpush.xpose.msrb.mxu1 %v1668_v59  ;;  %1747 = vmatpush.xpose.msrb.mxu2 %v1694_v24  ;;  %v1628_v63 = vmul.f32 %v2287_v28, %v1564_v15  ;;  %2312 = vrcp.f32 %v3390_v49  ;;  %v1627_v14 = vmul.f32 %v2291_v37, %v1563_v6 }
 0x4c1   :  { %v3532_v40 = vpop.xlane.xlu0 %1403  ;;  %v1517_v9 = vmul.f32 %v2301_v50, %v1372_v41  ;;  %v2303_v39 = vpop.eup %2302  ;;  %v1644_v15 = vmul.f32 %v2293_v54, %v1580_v27  ;;  %2314 = vrcp.f32 %v3286_v18 }
 0x4c2   :  { %v1538_v62 = vsub.f32 2.0, %v1474_v60  ;;  %v2305_v46 = vpop.eup %2304  ;;  %v1497_v10 = vmul.f32 %v2303_v39, %v3384_v34  ;;  %v1692_v0 = vmul.f32 %v3261_v20, %v1628_v63  ;;  %2316 = vrcp.f32 %v3338_v56 }
 0x4c3   :  { %v1581_v1 = vsub.f32 2.0, %v1517_v9  ;;  %v1514_v28 = vmul.f32 %v2305_v46, %v3453_v26  ;;  %v2307_v3 = vpop.eup %2306  ;;  %v1691_v60 = vmul.f32 %v3255_v35, %v1627_v14  ;;  %v1708_v8 = vmul.f32 %v3276_v53, %v1644_v15 }
 0x4c4   :  { %1738 = vmatpush.xpose.msrb.mxu1 %v1667_v29  ;;  %v1602_v41 = vmul.f32 %v2299_v42, %v1538_v62  ;;  %1748 = vmatpush.xpose.msrb.mxu2 %v1693_v4  ;;  %v2309_v42 = vpop.eup %2308  ;;  %v1561_v37 = vsub.f32 2.0, %v1497_v10  ;;  %v1496_v20 = vmul.f32 %v2307_v3, %v3422_v55  ;;  %2318 = vrcp.f32 %v3363_v44 }
 0x4c5   :  { %v1645_v47 = vmul.f32 %v2301_v50, %v1581_v1  ;;  %v1578_v54 = vsub.f32 2.0, %v1514_v28  ;;  %v1513_v5 = vmul.f32 %v2309_v42, %v3455_v32  ;;  %v1643_v50 = vmul.f32 %v2297_v38, %v1579_v13 }
 0x4c6   :  { %v1666_v31 = vmul.f32 %v3313_v19, %v1602_v41  ;;  %v2311_v19 = vpop.eup %2310  ;;  %2320 = vrcp.f32 %v3403_v22  ;;  %v1625_v29 = vmul.f32 %v2303_v39, %v1561_v37  ;;  %v1560_v6 = vsub.f32 2.0, %v1496_v20  ;;  %v3962_v37 = vld [vmem:[#allocation52_spill] sm:$0xff] }
 0x4c7   :  { %v1709_v59 = vmul.f32 %v3315_v23, %v1645_v47  ;;  %v1626_v23 = vmul.f32 %v2295_v30, %v1562_v51  ;;  %v2313_v24 = vpop.eup %2312  ;;  %v1495_v36 = vmul.f32 %v2311_v19, %v3325_v25  ;;  %v1642_v38 = vmul.f32 %v2305_v46, %v1578_v54 }
 0x4c8   :  { %v3550_v43 = vpop.xlane.xlu1 %1383  ;;  %1739 = vmatpush.xpose.msrb.mxu1 %v1666_v31  ;;  %1749 = vmatpush.xpose.msrb.mxu2 %v1692_v0  ;;  %v2315_v9 = vpop.eup %2314  ;;  %v1512_v55 = vmul.f32 %v2313_v24, %v3390_v49  ;;  %v1577_v35 = vsub.f32 2.0, %v1513_v5  ;;  %v1707_v53 = vmul.f32 %v3268_v61, %v1643_v50  ;;  %2322 = vrcp.f32 %v3310_v33 }
 0x4c9   :  { %v3552_v34 = vpop.xlane.xlu0 %1387  ;;  %v3555_v26 = vpop.xlane.xlu2 %1405  ;;  %1768 = vmatpush.xpose.msra.mxu3 %v1709_v59  ;;  %v1690_v30 = vmul.f32 %v3213_v48, %v1626_v23  ;;  %v1494_v12 = vmul.f32 %v2315_v9, %v3286_v18  ;;  %v1559_v48 = vsub.f32 2.0, %v1495_v36  ;;  %v1689_v61 = vmul.f32 %v3196_v58, %v1625_v29 }
 0x4ca   :  { %v2317_v32 = vpop.eup %2316  ;;  %v1576_v46 = vsub.f32 2.0, %v1512_v55  ;;  %v1641_v1 = vmul.f32 %v2309_v42, %v1577_v35  ;;  %v1706_v4 = vmul.f32 %v3233_v11, %v1642_v38  ;;  %v1624_v41 = vmul.f32 %v2307_v3, %v1560_v6  ;;  %v3965_v6 = vld [vmem:[#allocation53_spill] sm:$0xff] }
 0x4cb   :  { %v2319_v49 = vpop.eup %2318  ;;  %v1511_v39 = vmul.f32 %v2317_v32, %v3338_v56  ;;  %v1558_v47 = vsub.f32 2.0, %v1494_v12  ;;  %v1623_v56 = vmul.f32 %v2311_v19, %v1559_v48 }
 0x4cc   :  { %1750 = vmatpush.xpose.msrb.mxu2 %v1691_v60  ;;  %v2321_v27 = vpop.eup %2320  ;;  %v1493_v10 = vmul.f32 %v2319_v49, %v3363_v44  ;;  %v1640_v31 = vmul.f32 %v2313_v24, %v1576_v46  ;;  %v1688_v58 = vmul.f32 %v3237_v16, %v1624_v41  ;;  %v1705_v11 = vmul.f32 %v3249_v17, %v1641_v1 }
 0x4cd   :  { %1769 = vmatpush.xpose.msra.mxu3 %v1708_v8  ;;  %v1510_v51 = vmul.f32 %v2321_v27, %v3403_v22  ;;  %v1575_v28 = vsub.f32 2.0, %v1511_v39  ;;  %v1687_v59 = vmul.f32 %v3128_v45, %v1623_v56  ;;  %v1622_v42 = vmul.f32 %v2315_v9, %v1558_v47  ;;  %v3963_v8 = vld [vmem:[#allocation48_spill] sm:$0xff]  ;;  %v3964_v9 = vld [vmem:[#allocation50_spill] sm:$0xff] }
 0x4ce   :  { %v2323_v18 = vpop.eup %2322  ;;  %v1557_v13 = vsub.f32 2.0, %v1493_v10  ;;  %v1704_v54 = vmul.f32 %v3962_v37, %v1640_v31  ;;  %v3969_v56 = vld [vmem:[#allocation28_spill] sm:$0xff] }
 0x4cf   :  { %v1509_v44 = vmul.f32 %v2323_v18, %v3310_v33  ;;  %v1574_v22 = vsub.f32 2.0, %v1510_v51  ;;  %v1639_v19 = vmul.f32 %v2317_v32, %v1575_v28  ;;  %v1686_v45 = vmul.f32 %v3963_v8, %v1622_v42 }
 0x4d0   :  { %v3568_v62 = vpop.xlane.xlu1 %1347  ;;  %1751 = vmatpush.xpose.msrb.mxu2 %v1690_v30  ;;  %v1621_v23 = vmul.f32 %v2319_v49, %v1557_v13 }
 0x4d1   :  { %v3570_v63 = vpop.xlane.xlu0 %1351  ;;  %v1322_v25 = vpop.xlane.xlu2 %1321  ;;  %1770 = vmatpush.xpose.msra.mxu3 %v1707_v53  ;;  %v1573_v20 = vsub.f32 2.0, %v1509_v44  ;;  %v1638_v24 = vmul.f32 %v2321_v27, %v1574_v22  ;;  %v1703_v36 = vmul.f32 %v3964_v9, %v1639_v19  ;;  %v3970_v44 = vld [vmem:[#allocation60_spill] sm:$0xff] }
 0x4d2   :  { %2324 = vrcp.f32 %v1322_v25  ;;  %v1685_v35 = vmul.f32 %v3965_v6, %v1621_v23  ;;  %v3973_v9 = vld [vmem:[#allocation32_spill] sm:$0xff] }
 0x4d3   :  { %2326 = vrcp.f32 %v3507_v21  ;;  %v1637_v32 = vmul.f32 %v2323_v18, %v1573_v20  ;;  %v3968_v18 = vld [vmem:[#allocation6_spill] sm:$0xff] }
 0x4d4   :  { %1752 = vmatpush.xpose.msrb.mxu2 %v1689_v61  ;;  %2328 = vrcp.f32 %v3530_v57  ;;  %v3967_v61 = vld [vmem:[#allocation47_spill] sm:$0xff] }
 0x4d5   :  { %1771 = vmatpush.xpose.msra.mxu3 %v1706_v4  ;;  %2330 = vrcp.f32 %v3570_v63  ;;  %v1701_v4 = vmul.f32 %v3967_v61, %v1637_v32  ;;  %v3976_v61 = vld [vmem:[#allocation22_spill] sm:$0xff] }
 0x4d8   :  { %v2325_v14 = vpop.eup %2324  ;;  %v3583_v15 = vpop.xlane.xlu1 %1279  ;;  %1753 = vmatpush.xpose.msrb.mxu2 %v1688_v58 }
 0x4d9   :  { %v1284_v3 = vpop.xlane.xlu0 %1283  ;;  %v3585_v0 = vpop.xlane.xlu2 %1385  ;;  %1772 = vmatpush.xpose.msra.mxu3 %v1705_v11  ;;  %v1492_v17 = vmul.f32 %v2325_v14, %v1322_v25 }
 0x4da   :  { %v2327_v16 = vpop.eup %2326  ;;  %2332 = vrcp.f32 %v1284_v3 }
 0x4db   :  { %v2329_v33 = vpop.eup %2328  ;;  %v1508_v5 = vmul.f32 %v2327_v16, %v3507_v21  ;;  %v1556_v60 = vsub.f32 2.0, %v1492_v17  ;;  %2334 = vrcp.f32 %v3568_v62 }
 0x4dc   :  { %1754 = vmatpush.xpose.msrb.mxu2 %v1687_v59  ;;  %v1491_v50 = vmul.f32 %v2329_v33, %v3530_v57  ;;  %v2331_v55 = vpop.eup %2330  ;;  %v3966_v57 = vld [vmem:[#allocation54_spill] sm:$0xff] }
 0x4dd   :  { %1773 = vmatpush.xpose.msra.mxu3 %v1704_v54  ;;  %v1572_v53 = vsub.f32 2.0, %v1508_v5  ;;  %v1702_v12 = vmul.f32 %v3966_v57, %v1638_v24  ;;  %v1507_v49 = vmul.f32 %v2331_v55, %v3570_v63  ;;  %v1620_v39 = vmul.f32 %v2325_v14, %v1556_v60 }
 0x4de   :  { %v1555_v25 = vsub.f32 2.0, %v1491_v50  ;;  %v3972_v50 = vld [vmem:[#allocation29_spill] sm:$0xff] }
 0x4df   :  { %v1636_v27 = vmul.f32 %v2327_v16, %v1572_v53  ;;  %v1571_v10 = vsub.f32 2.0, %v1507_v49  ;;  %v1684_v47 = vmul.f32 %v3968_v18, %v1620_v39  ;;  %v3971_v16 = vld [vmem:[#allocation62_spill] sm:$0xff]  ;;  %v3974_v53 = vld [vmem:[#allocation7_spill] sm:$0xff] }
 0x4e0   :  { %v2333_v29 = vpop.eup %2332  ;;  %1755 = vmatpush.xpose.msrb.mxu2 %v1686_v45  ;;  %v3598_v48 = vpop.xlane.xlu1 %1313  ;;  %v1619_v63 = vmul.f32 %v2329_v33, %v1555_v25 }
 0x4e1   :  { %v1318_v30 = vpop.xlane.xlu0 %1317  ;;  %v1350_v38 = vpop.xlane.xlu2 %1349  ;;  %1774 = vmatpush.xpose.msra.mxu3 %v1703_v36  ;;  %v1473_v21 = vmul.f32 %v2333_v29, %v1284_v3  ;;  %v1700_v13 = vmul.f32 %v3970_v44, %v1636_v27  ;;  %v1635_v59 = vmul.f32 %v2331_v55, %v1571_v10  ;;  %v3975_v27 = vld [vmem:[#allocation43_spill] sm:$0xff] }
 0x4e2   :  { %2336 = vrcp.f32 %v1350_v38  ;;  %v2335_v41 = vpop.eup %2334  ;;  %v1683_v19 = vmul.f32 %v3971_v16, %v1619_v63 }
 0x4e3   :  { %2338 = vrcp.f32 %v1318_v30  ;;  %v1537_v46 = vsub.f32 2.0, %v1473_v21  ;;  %v1505_v22 = vmul.f32 %v2335_v41, %v3568_v62  ;;  %v1699_v60 = vmul.f32 %v3972_v50, %v1635_v59 }
 0x4e4   :  { %1756 = vmatpush.xpose.msrb.mxu2 %v1685_v35  ;;  %2340 = vrcp.f32 %v3583_v15 }
 0x4e5   :  { %1775 = vmatpush.xpose.msra.mxu3 %v1702_v12  ;;  %v1601_v1 = vmul.f32 %v2333_v29, %v1537_v46  ;;  %2342 = vrcp.f32 %v3555_v26  ;;  %v1569_v24 = vsub.f32 2.0, %v1505_v22 }
 0x4e6   :  { %2344 = vrcp.f32 %v3532_v40 }
 0x4e7   :  { %v1665_v28 = vmul.f32 %v3969_v56, %v1601_v1 }
 0x4e8   :  { %v2337_v51 = vpop.eup %2336  ;;  %1757 = vmatpush.xpose.msrb.mxu2 %v1684_v47  ;;  %v1312_v33 = vpop.xlane.xlu1 %1311 }
 0x4e9   :  { %v3605_v31 = vpop.xlane.xlu0 %1381  ;;  %v2339_v58 = vpop.eup %2338  ;;  %v1506_v11 = vmul.f32 %v2337_v51, %v1350_v38  ;;  %1776 = vmatpush.xpose.msra.mxu3 %v1701_v4  ;;  %1740 = vmatpush.xpose.msrb.mxu1 %v1665_v28  ;;  %v3977_v28 = vld [vmem:[#allocation26_spill] sm:$0xff] }
 0x4ea   :  { %v1282_v14 = vpop.xlane.xlu2 %1281  ;;  %v1490_v3 = vmul.f32 %v2339_v58, %v1318_v30  ;;  %v2341_v17 = vpop.eup %2340 }
 0x4eb   :  { %2346 = vrcp.f32 %v1282_v14  ;;  %v1570_v42 = vsub.f32 2.0, %v1506_v11  ;;  %v2343_v54 = vpop.eup %2342  ;;  %v1471_v62 = vmul.f32 %v2341_v17, %v3583_v15  ;;  %v1633_v15 = vmul.f32 %v2335_v41, %v1569_v24  ;;  %v3981_v24 = vld [vmem:[#allocation30_spill] sm:$0xff] }
 0x4ec   :  { %2348 = vrcp.f32 %v3499_v52  ;;  %v1554_v37 = vsub.f32 2.0, %v1490_v3  ;;  %1758 = vmatpush.xpose.msrb.mxu2 %v1683_v19  ;;  %v2345_v23 = vpop.eup %2344  ;;  %v1534_v45 = vmul.f32 %v2343_v54, %v3555_v26 }
 0x4ed   :  { %2350 = vrcp.f32 %v3536_v2  ;;  %1777 = vmatpush.xpose.msra.mxu3 %v1700_v13  ;;  %v1634_v5 = vmul.f32 %v2337_v51, %v1570_v42  ;;  %v1535_v6 = vsub.f32 2.0, %v1471_v62  ;;  %v1533_v26 = vmul.f32 %v2345_v23, %v3532_v40  ;;  %v3978_v13 = vld [vmem:[#allocation8_spill] sm:$0xff] }
 0x4ee   :  { %2352 = vrcp.f32 %v3598_v48  ;;  %v1618_v20 = vmul.f32 %v2339_v58, %v1554_v37  ;;  %v1598_v12 = vsub.f32 2.0, %v1534_v45  ;;  %v1697_v4 = vmul.f32 %v3976_v61, %v1633_v15  ;;  %v3979_v42 = vld [vmem:[#allocation24_spill] sm:$0xff]  ;;  %v3986_v15 = vld [vmem:[#allocation25_spill] sm:$0xff] }
 0x4ef   :  { %2354 = vrcp.f32 %v1312_v33  ;;  %v1698_v21 = vmul.f32 %v3974_v53, %v1634_v5  ;;  %v1599_v41 = vmul.f32 %v2341_v17, %v1535_v6  ;;  %v1597_v47 = vsub.f32 2.0, %v1533_v26 }
 0x4f0   :  { %v1682_v36 = vmul.f32 %v3973_v9, %v1618_v20  ;;  %v1662_v63 = vmul.f32 %v2343_v54, %v1598_v12  ;;  %v3980_v54 = vld [vmem:[#allocation9_spill] sm:$0xff]  ;;  %v3983_v9 = vld [vmem:[#allocation10_spill] sm:$0xff] }
 0x4f1   :  { %v2347_v8 = vpop.eup %2346  ;;  %v1346_v55 = vpop.xlane.xlu0 %1345  ;;  %1778 = vmatpush.xpose.msra.mxu3 %v1699_v60  ;;  %v1661_v59 = vmul.f32 %v2345_v23, %v1597_v47 }
 0x4f2   :  { %v1472_v30 = vmul.f32 %v2347_v8, %v1282_v14  ;;  %v1316_v29 = vpop.xlane.xlu2 %1315  ;;  %2356 = vrcp.f32 %v1346_v55  ;;  %v3618_v32 = vpop.eup %2348  ;;  %1759 = vmatpush.xpose.msrb.mxu2 %v1682_v36  ;;  %v1726_v16 = vmul.f32 %v3979_v42, %v1662_v63  ;;  %v3984_v36 = vld [vmem:[#allocation63_spill] sm:$0xff] }
 0x4f3   :  { %2358 = vrcp.f32 %v1316_v29  ;;  %v2351_v38 = vpop.eup %2350 }
 0x4f4   :  { %v1536_v35 = vsub.f32 2.0, %v1472_v30  ;;  %v2353_v57 = vpop.eup %2352  ;;  %2360 = vrcp.f32 %v3520_v7  ;;  %v1532_v18 = vmul.f32 %v2351_v38, %v3536_v2  ;;  %v1663_v2 = vmul.f32 %v3978_v13, %v1599_v41  ;;  %v3985_v30 = vld [vmem:[#allocation40_spill] sm:$0xff] }
 0x4f5   :  { %1779 = vmatpush.xpose.msra.mxu3 %v1698_v21  ;;  %v2355_v49 = vpop.eup %2354  ;;  %v1488_v46 = vmul.f32 %v2353_v57, %v3598_v48  ;;  %v1531_v48 = vmul.f32 %v3618_v32, %v3499_v52 }
 0x4f6   :  { %v1600_v25 = vmul.f32 %v2347_v8, %v1536_v35  ;;  %v1487_v3 = vmul.f32 %v2355_v49, %v1312_v33  ;;  %v1596_v22 = vsub.f32 2.0, %v1532_v18  ;;  %v3982_v33 = vld [vmem:[#allocation38_spill] sm:$0xff]  ;;  %v3992_v18 = vld [vmem:[#allocation12_spill] sm:$0xff] }
 0x4f7   :  { %v1552_v14 = vsub.f32 2.0, %v1488_v46  ;;  %v1595_v8 = vsub.f32 2.0, %v1531_v48  ;;  %v3989_v46 = vld [vmem:[#allocation61_spill] sm:$0xff] }
 0x4f8   :  { %v2357_v39 = vpop.eup %2356  ;;  %v1664_v1 = vmul.f32 %v3975_v27, %v1600_v25  ;;  %v1551_v62 = vsub.f32 2.0, %v1487_v3  ;;  %v1660_v23 = vmul.f32 %v2351_v38, %v1596_v22  ;;  %v3988_v25 = vld [vmem:[#allocation18_spill] sm:$0xff]  ;;  %v3990_v27 = vld [vmem:[#allocation37_spill] sm:$0xff]  ;;  %v3995_v3 = vld [vmem:[#allocation55_spill] sm:$0xff] }
 0x4f9   :  { %v2359_v10 = vpop.eup %2358  ;;  %v1504_v40 = vmul.f32 %v2357_v39, %v1346_v55  ;;  %v1344_v51 = vpop.xlane.xlu0 %1343  ;;  %1780 = vmatpush.xpose.msra.mxu3 %v1697_v4  ;;  %v1616_v50 = vmul.f32 %v2353_v57, %v1552_v14  ;;  %v1725_v55 = vmul.f32 %v3984_v36, %v1661_v59  ;;  %v1659_v21 = vmul.f32 %v3618_v32, %v1595_v8  ;;  %v3987_v57 = vld [vmem:[#allocation59_spill] sm:$0xff] }
 0x4fa   :  { %v1489_v56 = vmul.f32 %v2359_v10, %v1316_v29  ;;  %1741 = vmatpush.xpose.msrb.mxu1 %v1664_v1  ;;  %2362 = vrcp.f32 %v1344_v51  ;;  %v2361_v11 = vpop.eup %2360  ;;  %v1615_v35 = vmul.f32 %v2355_v49, %v1551_v62  ;;  %v1724_v26 = vmul.f32 %v3987_v57, %v1660_v23  ;;  %v3991_v49 = vld [vmem:[#allocation58_spill] sm:$0xff] }
 0x4fb   :  { %2364 = vrcp.f32 %v3977_v28  ;;  %v1568_v58 = vsub.f32 2.0, %v1504_v40  ;;  %v1530_v37 = vmul.f32 %v2361_v11, %v3520_v7  ;;  %v1680_v6 = vmul.f32 %v3986_v15, %v1616_v50 }
 0x4fc   :  { %v1553_v44 = vsub.f32 2.0, %v1489_v56  ;;  %2366 = vrcp.f32 %v3981_v24  ;;  %v1679_v1 = vmul.f32 %v3990_v27, %v1615_v35  ;;  %v3994_v56 = vld [vmem:[#allocation56_spill] sm:$0xff]  ;;  %v4002_v27 = vld [vmem:[#allocation21_spill] sm:$0xff] }
 0x4fd   :  { %v1632_v19 = vmul.f32 %v2357_v39, %v1568_v58  ;;  %2368 = vrcp.f32 %v3985_v30  ;;  %v1594_v53 = vsub.f32 2.0, %v1530_v37 }
 0x4fe   :  { %1742 = vmatpush.xpose.msrb.mxu1 %v1663_v2  ;;  %v1617_v17 = vmul.f32 %v2359_v10, %v1553_v44  ;;  %2370 = vrcp.f32 %v3989_v46  ;;  %v1723_v10 = vmul.f32 %v3991_v49, %v1659_v21  ;;  %v1380_v2 = vpop.xlane.xlu2 %1379 }
 0x4ff   :  { %v1696_v20 = vmul.f32 %v3980_v54, %v1632_v19  ;;  %v1658_v4 = vmul.f32 %v2361_v11, %v1594_v53  ;;  %2372 = vrcp.f32 %v3552_v34 }
 0x500   :  { %v2363_v52 = vpop.eup %2362  ;;  %v1681_v5 = vmul.f32 %v3982_v33, %v1617_v17  ;;  %2374 = vrcp.f32 %v3585_v0 }
 0x501   :  { %v2365_v60 = vpop.eup %2364  ;;  %v1503_v45 = vmul.f32 %v2363_v52, %v1344_v51  ;;  %1743 = vmatmul.f32.vlgmr.msrb.gmra.mxu1 %v3983_v9  ;;  %1781 = vmatpush.xpose.msra.mxu3 %v1696_v20  ;;  %v3993_v51 = vld [vmem:[#allocation11_spill] sm:$0xff]  ;;  %2376 = vrcp.f32 %v3550_v43 }
 0x502   :  { %1787 = vmatpush.xpose.msra.mxu1 %v1726_v16  ;;  %1760 = vmatpush.xpose.msrb.mxu2 %v1681_v5  ;;  %v1529_v29 = vmul.f32 %v2365_v60, %v3977_v28  ;;  %v2367_v12 = vpop.eup %2366  ;;  %v1722_v28 = vmul.f32 %v3994_v56, %v1658_v4  ;;  %v3996_v16 = vld [vmem:[#allocation57_spill] sm:$0xff]  ;;  %2378 = vrcp.f32 %v3605_v31  ;;  %v1820_v56 = vld [vmem:[%s3745_s4 + $0x28] sm:$0xff] }
 0x503   :  { %v1567_v7 = vsub.f32 2.0, %v1503_v45  ;;  %v1528_v41 = vmul.f32 %v2367_v12, %v3981_v24  ;;  %v2369_v32 = vpop.eup %2368  ;;  %2380 = vrcp.f32 %v1380_v2 }
 0x504   :  { %v1593_v61 = vsub.f32 2.0, %v1529_v29  ;;  %v1527_v47 = vmul.f32 %v2369_v32, %v3985_v30  ;;  %v2371_v48 = vpop.eup %2370 }
 0x505   :  { %v1631_v38 = vmul.f32 %v2363_v52, %v1567_v7  ;;  %v1592_v40 = vsub.f32 2.0, %v1528_v41  ;;  %v1526_v58 = vmul.f32 %v2371_v48, %v3989_v46  ;;  %v2373_v13 = vpop.eup %2372  ;;  %v3997_v52 = vld [vmem:[#allocation51_spill] sm:$0xff] }
 0x506   :  { %1788 = vmatpush.xpose.msra.mxu1 %v1725_v55  ;;  %1761 = vmatpush.xpose.msrb.mxu2 %v1680_v6  ;;  %v1657_v63 = vmul.f32 %v2365_v60, %v1593_v61  ;;  %v1591_v11 = vsub.f32 2.0, %v1527_v47  ;;  %v1525_v42 = vmul.f32 %v2373_v13, %v3552_v34  ;;  %v2375_v17 = vpop.eup %2374  ;;  %v1378_v34 = vpop.xlane.xlu2 %1377  ;;  %v3998_v60 = vld [vmem:[#allocation49_spill] sm:$0xff]  ;;  %v3999_v55 = vld [vmem:[#allocation42_spill] sm:$0xff]  ;;  %v4000_v6 = vld [vmem:[#allocation44_spill] sm:$0xff] }
 0x507   :  { %v1695_v39 = vmul.f32 %v3988_v25, %v1631_v38  ;;  %v1656_v14 = vmul.f32 %v2367_v12, %v1592_v40  ;;  %v1590_v22 = vsub.f32 2.0, %v1526_v58  ;;  %v1524_v20 = vmul.f32 %v2375_v17, %v3585_v0  ;;  %v2377_v62 = vpop.eup %2376  ;;  %v1376_v0 = vpop.xlane.xlu0 %1375  ;;  %v4003_v41 = vld [vmem:[#allocation27_spill] sm:$0xff]  ;;  %v4005_v47 = vld [vmem:[#allocation5_spill] sm:$0xff] }
 0x508   :  { %v1721_v44 = vmul.f32 %v3995_v3, %v1657_v63  ;;  %v1655_v59 = vmul.f32 %v2369_v32, %v1591_v11  ;;  %v1589_v54 = vsub.f32 2.0, %v1525_v42  ;;  %v1523_v33 = vmul.f32 %v2377_v62, %v3550_v43  ;;  %v2379_v23 = vpop.eup %2378  ;;  %v4004_v32 = vld [vmem:[#allocation35_spill] sm:$0xff]  ;;  %v4006_v40 = vld [vmem:[#allocation13_spill] sm:$0xff]  ;;  %v1816_v42 = vld [vmem:[%s3745_s4 + $0x8] sm:$0xff] }
 0x509   :  { %1782 = vmatpush.xpose.msra.mxu3 %v1695_v39  ;;  %v1720_v19 = vmul.f32 %v3996_v16, %v1656_v14  ;;  %v1654_v37 = vmul.f32 %v2371_v48, %v1590_v22  ;;  %v1588_v50 = vsub.f32 2.0, %v1524_v20  ;;  %2382 = vrcp.f32 %v1378_v34  ;;  %v2381_v30 = vpop.eup %2380  ;;  %v1815_v48 = vld [vmem:[%s3745_s4] sm:$0xff]  ;;  %v1822_v22 = vld [vmem:[%s3745_s4 + $0x38] sm:$0xff]  ;;  %v1813_v20 = vld [vmem:[%s3744_s3 + $0x30] sm:$0xff] }
 0x50a   :  { %1789 = vmatpush.xpose.msra.mxu1 %v1724_v26  ;;  %1762 = vmatpush.xpose.msrb.mxu2 %v1679_v1  ;;  %v1719_v24 = vmul.f32 %v3997_v52, %v1655_v59  ;;  %v1653_v5 = vmul.f32 %v2373_v13, %v1589_v54  ;;  %v1587_v45 = vsub.f32 2.0, %v1523_v33  ;;  %v1522_v36 = vmul.f32 %v2379_v23, %v3605_v31  ;;  %v4001_v26 = vld [vmem:[#allocation20_spill] sm:$0xff]  ;;  %v1807_v3 = vld [vmem:[%s3744_s3] sm:$0xff]  ;;  %v1809_v59 = vld [vmem:[%s3744_s3 + $0x10] sm:$0xff] }
 0x50b   :  { %v1718_v8 = vmul.f32 %v3998_v60, %v1654_v37  ;;  %v1652_v9 = vmul.f32 %v2375_v17, %v1588_v50  ;;  %2384 = vrcp.f32 %v1376_v0  ;;  %v1521_v15 = vmul.f32 %v2381_v30, %v1380_v2  ;;  %v1819_v13 = vld [vmem:[%s3745_s4 + $0x20] sm:$0xff]  ;;  %v1808_v2 = vld [vmem:[%s3744_s3 + $0x8] sm:$0xff]  ;;  %v1810_v16 = vld [vmem:[%s3744_s3 + $0x18] sm:$0xff] }
 0x50c   :  { %1783 = vmatmul.f32.vlgmr.msra.gmra.mxu3 %v3992_v18  ;;  %v1717_v7 = vmul.f32 %v3999_v55, %v1653_v5  ;;  %v1651_v29 = vmul.f32 %v2377_v62, %v1587_v45  ;;  %v1586_v43 = vsub.f32 2.0, %v1522_v36  ;;  %v1818_v17 = vld [vmem:[%s3745_s4 + $0x18] sm:$0xff]  ;;  %v1811_v37 = vld [vmem:[%s3744_s3 + $0x20] sm:$0xff]  ;;  %v1812_v54 = vld [vmem:[%s3744_s3 + $0x28] sm:$0xff] }
 0x50d   :  { %1763 = vmatmul.f32.vlgmr.msrb.gmra.mxu2 %v3993_v51  ;;  %v1716_v35 = vmul.f32 %v4000_v6, %v1652_v9  ;;  %v1585_v38 = vsub.f32 2.0, %v1521_v15  ;;  %v2428_v51 = vmov 0   ;;  %v1814_v52 = vld [vmem:[%s3744_s3 + $0x38] sm:$0xff]  ;;  %s2429_s3 = smov [#allocation2]  }
 0x50e   :  { %1790 = vmatpush.xpose.msra.mxu1 %v1723_v10  ;;  %v1650_v21 = vmul.f32 %v2379_v23, %v1586_v43  ;;  %v1715_v12 = vmul.f32 %v4001_v26, %v1651_v29  ;;  %2128 = vset.pattern.permute.xlu1 %v2428_v51  ;;  %s2016_s6 = sshll.u32 %s2429_s3, 4  ;;  %s2017_s6 = int_to_ptr.vmem [resolvable:$true] %s2016_s6 }
 0x50f   :  { %v2383_v53 = vpop.eup %2382  ;;  %v1649_v31 = vmul.f32 %v2381_v30, %v1585_v38  ;;  %2127 = vset.pattern.permute.xlu2 %v2428_v51  ;;  %1850 = vperm.xlu1 %2128, %v1820_v56  }
 0x510   :  { %v1520_v57 = vmul.f32 %v2383_v53, %v1378_v34  ;;  %v1714_v1 = vmul.f32 %v4002_v27, %v1650_v21  ;;  %2129 = vset.pattern.permute.xlu0 %v2428_v51  ;;  %1845 = vperm.xlu2 %2127, %v1819_v13  }
 0x511   :  { %v2385_v25 = vpop.eup %2384  ;;  %v1713_v49 = vmul.f32 %v4003_v41, %v1649_v31 }
 0x512   :  { %1791 = vmatpush.xpose.msra.mxu1 %v1722_v28  ;;  %v1584_v39 = vsub.f32 2.0, %v1520_v57  ;;  %v1519_v46 = vmul.f32 %v2385_v25, %v1376_v0 }
 0x514   :  { %v1648_v61 = vmul.f32 %v2383_v53, %v1584_v39  ;;  %v1583_v4 = vsub.f32 2.0, %v1519_v46 }
 0x516   :  { %1792 = vmatpush.xpose.msra.mxu1 %v1721_v44  ;;  %v1647_v10 = vmul.f32 %v2385_v25, %v1583_v4  ;;  %v1712_v18 = vmul.f32 %v4004_v32, %v1648_v61  ;;  %v1817_v44 = vld [vmem:[%s3745_s4 + $0x10] sm:$0xff] }
 0x517   :  { %1825 = vperm.xlu1 %2128, %v1815_v48  }
 0x518   :  { %v1711_v63 = vmul.f32 %v4005_v47, %v1647_v10  ;;  %1860 = vperm.xlu2 %2127, %v1822_v22  }
 0x51a   :  { %1793 = vmatpush.xpose.msra.mxu1 %v1720_v19  ;;  %v1821_v19 = vld [vmem:[%s3745_s4 + $0x30] sm:$0xff] }
 0x51b   :  { %1855 = vperm.xlu0 %2129, %v1821_v19  }
 0x51e   :  { %1794 = vmatpush.xpose.msra.mxu1 %v1719_v24 }
 0x51f   :  { %1835 = vperm.xlu1 %2128, %v1817_v44  }
 0x520   :  { %1830 = vperm.xlu2 %2127, %v1816_v42  }
 0x522   :  { %1795 = vmatpush.xpose.msra.mxu1 %v1718_v8 }
 0x526   :  { %1796 = vmatpush.xpose.msra.mxu1 %v1717_v7 }
 0x528   :  { %1840 = vperm.xlu2 %2127, %v1818_v17  }
 0x52a   :  { %1797 = vmatpush.xpose.msra.mxu1 %v1716_v35 }
 0x52e   :  { %1798 = vmatpush.xpose.msra.mxu1 %v1715_v12 }
 0x532   :  { %1799 = vmatpush.xpose.msra.mxu1 %v1714_v1 }
 0x536   :  { %1800 = vmatpush.xpose.msra.mxu1 %v1713_v49 }
 0x53a   :  { %1801 = vmatpush.xpose.msra.mxu1 %v1712_v18 }
 0x53e   :  { %1802 = vmatpush.xpose.msra.mxu1 %v1711_v63 }
 0x541   :  { %1803 = vmatmul.f32.vlgmr.msra.gmra.mxu1 %v4006_v40 }
 0x56a   :  { %v1846_v50 = vpop.permute.xlu2 %1845 }
 0x572   :  { %v1861_v38 = vpop.permute.xlu2 %1860 }
 0x57e   :  { %v1744_v28 = vpop.f32.mrf.mxu1 }
 0x581   :  { %v1851_v23 = vpop.permute.xlu1 %1850 }
 0x589   :  { %v1826_v12 = vpop.permute.xlu1 %1825 }
 0x58d   :  { %v1856_v7 = vpop.permute.xlu0 %1855 }
 0x58f   :  { %v1784_v11 = vpop.f32.mrf.mxu3 }
 0x590   :  { %v1764_v14 = vpop.f32.mrf.mxu2 }
 0x5be   :  { %v1804_v58 = vpop.f32.mrf.mxu1 }
 0x5bf   :  { %1899 = vmatpush.msra.mxu2 %v1804_v58 }
 0x5c1   :  { %1900 = vmatpush.msra.mxu2 %v1784_v11 }
 0x5c3   :  { %1901 = vmatpush.msra.mxu2 %v1764_v14 }
 0x5c5   :  { %1902 = vmatpush.msra.mxu2 %v1744_v28  ;;  %v1831_v28 = vpop.permute.xlu2 %1830 }
 0x5c6   :  { %2106 = vmatmul.msk.f32.vlgmr.msra.gmra.mxu2 %vm89_vm0, %v1807_v3 }
 0x5ce   :  { %2107 = vmatmul.msk.f32.gmra.mxu2 %vm89_vm0, %v1808_v2 }
 0x5d6   :  { %2108 = vmatmul.msk.f32.gmra.mxu2 %vm89_vm0, %v1809_v59 }
 0x5de   :  { %2109 = vmatmul.msk.f32.gmra.mxu2 %vm89_vm0, %v1810_v16 }
 0x5e6   :  { %2110 = vmatmul.msk.f32.gmra.mxu2 %vm89_vm0, %v1811_v37  ;;  %v1836_v37 = vpop.permute.xlu1 %1835 }
 0x5ee   :  { %2111 = vmatmul.msk.f32.gmra.mxu2 %vm89_vm0, %v1812_v54 }
 0x5f6   :  { %2112 = vmatmul.msk.f32.gmra.mxu2 %vm89_vm0, %v1813_v20 }
 0x5fe   :  { %2113 = vmatmul.msk.f32.gmra.mxu2 %vm89_vm0, %v1814_v52 }
 0x649   :  { %v1904_v24 = vpop.f32.mrf.mxu2 }
 0x64a   :  { %v1905_v4 = vadd.f32 %v1904_v24, %v1826_v12 }
 0x651   :  { %v3729_v62 = vpop.f32.mrf.mxu2 }
 0x652   :  { %v1908_v44 = vadd.f32 %v3729_v62, %v1831_v28 }
 0x659   :  { %v3731_v33 = vpop.f32.mrf.mxu2 }
 0x65a   :  { %v1911_v24 = vadd.f32 %v3731_v33, %v1836_v37 }
 0x661   :  { %v3733_v5 = vpop.f32.mrf.mxu2 }
 0x669   :  { %v1916_v34 = vpop.f32.mrf.mxu2 }
 0x66a   :  { %v1917_v60 = vadd.f32 %v1916_v34, %v1846_v50 }
 0x66c   :  { %v2114_v8 = vmul.f32 -1.442695, %v1917_v60 }
 0x66e   :  { %2386 = vpow2.f32 %v2114_v8 }
 0x671   :  { %v1919_v45 = vpop.f32.mrf.mxu2 }
 0x672   :  { %v1920_v9 = vadd.f32 %v1919_v45, %v1851_v23 }
 0x674   :  { %v2387_v36 = vpop.eup %2386  ;;  %v2115_v0 = vmul.f32 -1.442695, %v1920_v9 }
 0x675   :  { %v1940_v55 = vadd.f32 1.0, %v2387_v36  ;;  %v1841_v36 = vpop.permute.xlu2 %1840 }
 0x676   :  { %2388 = vpow2.f32 %v2115_v0 }
 0x677   :  { %2390 = vrcp.f32 %v1940_v55  ;;  %v1955_v57 = vand.u32 2147483648, %v1940_v55  ;;  %v1953_v31 = vand.u32 2147483647, %v1940_v55  ;;  %vm1949_vm3 = vweird.f32 %v1940_v55 }
 0x679   :  { %v1922_v30 = vpop.f32.mrf.mxu2  ;;  %v1956_v41 = vor.u32 1.1754944e-38, %v1955_v57  ;;  %vm1954_vm5 = vcmp.eq.f32.partialorder %v1953_v31, 8.507059e+37 }
 0x67a   :  { %v1923_v29 = vadd.f32 %v1922_v30, %v1856_v7 }
 0x67c   :  { %v2389_v43 = vpop.eup %2388  ;;  %v2116_v15 = vmul.f32 -1.442695, %v1923_v29 }
 0x67d   :  { %v2391_v6 = vpop.eup %2390  ;;  %v1941_v35 = vadd.f32 1.0, %v2389_v43 }
 0x67e   :  { %v1945_v53 = vmul.f32 %v2391_v6, %v1940_v55  ;;  %2392 = vpow2.f32 %v2116_v15  ;;  %vm1950_vm0 = vweird.f32 %v2391_v6  ;;  %v1914_v55 = vadd.f32 %v3733_v5, %v1841_v36 }
 0x67f   :  { %2394 = vrcp.f32 %v1941_v35  ;;  %vm1951_vm4 = vmor %vm1949_vm3, %vm1950_vm0  ;;  %v1970_v40 = vand.u32 2147483648, %v1941_v35  ;;  %v1968_v56 = vand.u32 2147483647, %v1941_v35  ;;  %vm1964_vm7 = vweird.f32 %v1941_v35 }
 0x680   :  { %v1946_v21 = vsub.f32 1.0, %v1945_v53 }
 0x681   :  { %v1925_v26 = vpop.f32.mrf.mxu2  ;;  %v1971_v14 = vor.u32 1.1754944e-38, %v1970_v40  ;;  %vm1969_vm9 = vcmp.eq.f32.partialorder %v1968_v56, 8.507059e+37 }
 0x682   :  { %v1947_v25 = vmul.f32 %v2391_v6, %v1946_v21  ;;  %v1926_v39 = vadd.f32 %v1925_v26, %v1861_v38 }
 0x684   :  { %v2393_v46 = vpop.eup %2392  ;;  %v1948_v27 = vadd.f32 %v2391_v6, %v1947_v25  ;;  %v2117_v1 = vmul.f32 -1.442695, %v1926_v39 }
 0x685   :  { %v2395_v61 = vpop.eup %2394  ;;  %v1942_v49 = vadd.f32 1.0, %v2393_v46 }
 0x686   :  { %v1952_v10 = vsel %vm1951_vm4, %v2391_v6, %v1948_v27  ;;  %v1960_v32 = vmul.f32 %v2395_v61, %v1941_v35  ;;  %2396 = vpow2.f32 %v2117_v1  ;;  %vm1965_vm6 = vweird.f32 %v2395_v61 }
 0x687   :  { %v1957_v18 = vsel %vm1954_vm5, %v1956_v41, %v1952_v10  ;;  %2398 = vrcp.f32 %v1942_v49  ;;  %vm1966_vm8 = vmor %vm1964_vm7, %vm1965_vm6  ;;  %v1985_v16 = vand.u32 2147483648, %v1942_v49  ;;  %v1983_v17 = vand.u32 2147483647, %v1942_v49 }
 0x688   :  { %v2004_v47 = vmul.f32 %v1957_v18, %v1905_v4  ;;  %v1961_v63 = vsub.f32 1.0, %v1960_v32  ;;  %vm1979_vm11 = vweird.f32 %v1942_v49 }
 0x689   :  { %v1986_v52 = vor.u32 1.1754944e-38, %v1985_v16  ;;  %vm1984_vm13 = vcmp.eq.f32.partialorder %v1983_v17, 8.507059e+37 }
 0x68a   :  { %2008 = vst [vmem:[#allocation2] sm:$0xff] %v2004_v47  ;;  %v1962_v51 = vmul.f32 %v2395_v61, %v1961_v63 }
 0x68c   :  { %v2397_v48 = vpop.eup %2396  ;;  %v1963_v58 = vadd.f32 %v2395_v61, %v1962_v51 }
 0x68d   :  { %v2399_v11 = vpop.eup %2398  ;;  %v1943_v3 = vadd.f32 1.0, %v2397_v48 }
 0x68e   :  { %v1967_v13 = vsel %vm1966_vm8, %v2395_v61, %v1963_v58  ;;  %v1975_v2 = vmul.f32 %v2399_v11, %v1942_v49  ;;  %vm1980_vm10 = vweird.f32 %v2399_v11 }
 0x68f   :  { %v1972_v22 = vsel %vm1969_vm9, %v1971_v14, %v1967_v13  ;;  %2400 = vrcp.f32 %v1943_v3  ;;  %vm1981_vm12 = vmor %vm1979_vm11, %vm1980_vm10  ;;  %v2000_v23 = vand.u32 2147483648, %v1943_v3  ;;  %v1998_v9 = vand.u32 2147483647, %v1943_v3 }
 0x690   :  { %v2005_v59 = vmul.f32 %v1972_v22, %v1908_v44  ;;  %v1976_v42 = vsub.f32 1.0, %v1975_v2  ;;  %vm1994_vm15 = vweird.f32 %v1943_v3 }
 0x691   :  { %v2001_v33 = vor.u32 1.1754944e-38, %v2000_v23  ;;  %vm1999_vm2 = vcmp.eq.f32.partialorder %v1998_v9, 8.507059e+37 }
 0x692   :  { %2009 = vst [vmem:[#allocation2 + $0x8] sm:$0xff] %v2005_v59  ;;  %v1977_v19 = vmul.f32 %v2399_v11, %v1976_v42 }
 0x694   :  { %v1978_v54 = vadd.f32 %v2399_v11, %v1977_v19 }
 0x695   :  { %v2401_v20 = vpop.eup %2400 }
 0x696   :  { %v1982_v62 = vsel %vm1981_vm12, %v2399_v11, %v1978_v54  ;;  %v1990_v50 = vmul.f32 %v2401_v20, %v1943_v3  ;;  %vm1995_vm14 = vweird.f32 %v2401_v20 }
 0x697   :  { %v1987_v34 = vsel %vm1984_vm13, %v1986_v52, %v1982_v62  ;;  %vm1996_vm1 = vmor %vm1994_vm15, %vm1995_vm14 }
 0x698   :  { %v2006_v60 = vmul.f32 %v1987_v34, %v1911_v24  ;;  %v1991_v8 = vsub.f32 1.0, %v1990_v50 }
 0x69a   :  { %2010 = vst [vmem:[#allocation2 + $0x10] sm:$0xff] %v2006_v60  ;;  %v1992_v45 = vmul.f32 %v2401_v20, %v1991_v8 }
 0x69c   :  { %v1993_v0 = vadd.f32 %v2401_v20, %v1992_v45 }
 0x69e   :  { %v1997_v7 = vsel %vm1996_vm1, %v2401_v20, %v1993_v0 }
 0x69f   :  { %v2002_v30 = vsel %vm1999_vm2, %v2001_v33, %v1997_v7 }
 0x6a0   :  { %v2007_v29 = vmul.f32 %v2002_v30, %v1914_v55 }
 0x6a2   :  { %2011 = vst [vmem:[#allocation2 + $0x18] sm:$0xff] %v2007_v29 }
 0x6a3   :  { %2024 = dma.vmem_to_hbm [thread:$0]  %s2017_s6, 512, %s2019_s9, [#allocation3], %s2430_s10, %s2430_s10, %s2431_s1  }
 0x6a4   :  { %2426 = dma.done.wait [#allocation3], 512  }
 0x6a5   :  { %2427 = vsyncadd [#allocation3], 4294966784 }
 0x6a6   :  { %2029 = vsyncpa [#allocation3], 1 }

</bundles_post_ra>
